<compile_context>
chip_gen: v7x
topology: tpu7x:2x2x1
jax: 0.10.0
libtpu: 0.0.40
codegen_flags: <defaults>
</compile_context>

<pallas_src>
import jax
import jax.numpy as jnp
from jax.experimental import pallas as pl
from jax.experimental.pallas import tpu as pltpu


def _round_up(n, m):
    return ((n + m - 1) // m) * m


def _make_proto_kernel(tbi, tfi, compute_dtype):
    """Kernel body for one (class_tile, batch_tile, feature_tile) grid step.

    Refs per grid step (c, b, f):
      x_ref  : (TB, TF)  batch tile of inputs
      p_ref  : (TF, TC)  transposed, already-sigmoided prototype tile
      o_ref  : (TB, TC)  output tile (lane-dense: TC is a multiple of 128)
      acc_ref: (TB, TC)  f32 accumulator scratch (resident across f)
    """

    def kernel(x_ref, p_ref, o_ref, acc_ref):
        f = pl.program_id(2)              # feature-tile index (reduction axis)
        nf = pl.num_programs(2)
        tb, tf_ = x_ref.shape
        tc = p_ref.shape[1]

        # Zero the accumulator at the start of each feature sweep.
        @pl.when(f == 0)
        def _():
            acc_ref[...] = jnp.zeros_like(acc_ref)

        # Batch sub-chunks of tbi rows; each carries a small register-resident
        # f32 partial and touches acc_ref exactly once.
        @pl.loop(0, tb // tbi)
        def _(i):
            row = pl.multiple_of(i * tbi, tbi)
            partial = jnp.zeros((tbi, tc), jnp.float32)
            # Fully unrolled feature sub-loop: static offsets, the
            # (tbi, tfi, tc) |x - p| temp stays in vector registers.
            for j in range(tf_ // tfi):
                col = j * tfi
                xij = x_ref[pl.ds(row, tbi), col:col + tfi].astype(compute_dtype)
                pj = p_ref[col:col + tfi, :]                      # (tfi, tc)
                d = jnp.abs(xij[:, :, None] - pj[None, :, :])     # (tbi, tfi, tc)
                partial = partial + jnp.sum(d, axis=1, dtype=jnp.float32)
            acc_ref[pl.ds(row, tbi), :] += partial

        # Write the finished (TB, TC) tile on the last feature step.
        @pl.when(f == nf - 1)
        def _():
            o_ref[...] = acc_ref[...].astype(o_ref.dtype)

    return kernel


def prototype_classifier_forward(
    x,
    prototypes,
    *,
    batch_tile=512,
    class_tile=256,
    feature_tile=512,
    inner_batch_tile=None,
    inner_feature_tile=None,
    compute_dtype=None,
):
    """dist[b, c] = sum_f |x[b, f] - sigmoid(prototypes[c, f])|.

    x: (B, F), prototypes: (C, F)  ->  (B, C), dtype = x.dtype.
    On v5e pass compute_dtype=jnp.float32 for bf16 inputs (no bf16 VPU there).
    """
    B, F = x.shape
    C, F2 = prototypes.shape
    assert F == F2, "feature dims must match"

    out_dtype = x.dtype
    if compute_dtype is None:
        compute_dtype = jnp.bfloat16 if x.dtype == jnp.bfloat16 else jnp.float32
    compute_dtype = jnp.dtype(compute_dtype)

    # Sublane packing: 8 rows for 32-bit, 16 for 16-bit dtypes.
    x_pack = 8 * max(1, 4 // jnp.dtype(x.dtype).itemsize)
    c_pack = 8 * max(1, 4 // compute_dtype.itemsize)
    sub_tile = max(x_pack, c_pack)

    # Grid-level tiles, clamped to the (padded) problem dims.
    TB = _round_up(min(batch_tile, _round_up(B, sub_tile)), sub_tile)
    B_pad = _round_up(B, TB)
    TC = _round_up(min(class_tile, _round_up(C, 128)), 128)
    C_pad = _round_up(C, TC)
    TF = _round_up(min(feature_tile, _round_up(F, 128)), 128)
    F_pad = _round_up(F, TF)

    # Inner sub-tiles: one sublane tile each keeps the |x - p| intermediate
    # register-resident (the main perf fix vs. the previous version).
    tbi = inner_batch_tile or sub_tile
    if tbi <= 0 or TB % tbi != 0:
        tbi = sub_tile
    tfi = inner_feature_tile or c_pack
    if tfi <= 0 or TF % tfi != 0:
        tfi = c_pack

    nb, nc, nf = B_pad // TB, C_pad // TC, F_pad // TF

    # sigmoid(prototypes) hoisted out of the kernel: one elementwise pass,
    # result in compute_dtype, transposed so classes sit on the lane axis.
    p_sig_t = jnp.transpose(
        jax.nn.sigmoid(prototypes.astype(jnp.float32)).astype(compute_dtype))
    if (F_pad, C_pad) != (F, C):
        # Pads (post-sigmoid) with 0; padded features contribute |0 - 0| = 0.
        p_sig_t = jnp.pad(p_sig_t, ((0, F_pad - F), (0, C_pad - C)))

    x_p = x
    if (B_pad, F_pad) != (B, F):
        x_p = jnp.pad(x, ((0, B_pad - B), (0, F_pad - F)))

    kernel = _make_proto_kernel(tbi, tfi, compute_dtype)

    # Per-step VMEM footprint: double-buffered x / p / out tiles + accumulator.
    footprint = (2 * TB * TF * jnp.dtype(x_p.dtype).itemsize
                 + 2 * TF * TC * compute_dtype.itemsize
                 + 2 * TB * TC * jnp.dtype(out_dtype).itemsize
                 + TB * TC * 4)
    vmem_limit = int(min(48 * 1024 * 1024, max(32 * 1024 * 1024, 2 * footprint)))

    out = pl.pallas_call(
        kernel,
        out_shape=jax.ShapeDtypeStruct((B_pad, C_pad), out_dtype),
        grid_spec=pltpu.PrefetchScalarGridSpec(
            num_scalar_prefetch=0,
            grid=(nc, nb, nf),                                   # reduction axis last
            in_specs=[
                pl.BlockSpec((TB, TF), lambda c, b, f: (b, f)),  # x
                pl.BlockSpec((TF, TC), lambda c, b, f: (f, c)),  # sigmoid(p)^T
            ],
            out_specs=pl.BlockSpec((TB, TC), lambda c, b, f: (b, c)),
            scratch_shapes=[pltpu.VMEM((TB, TC), jnp.float32)],  # accumulator
        ),
        compiler_params=pltpu.CompilerParams(
            # class & batch axes: parallel (shards across v7x's 2 TCs;
            # no-op on v5e/v6e).  feature axis: arbitrary (accumulator).
            dimension_semantics=("parallel", "parallel", "arbitrary"),
            vmem_limit_bytes=vmem_limit,
        ),
    )(x_p, p_sig_t)

    return out[:B, :C]


def prototype_classifier_forward_ref(x, prototypes):
    """Pure-JAX reference matching the PyTorch forward (f32 math)."""
    p = jax.nn.sigmoid(prototypes.astype(jnp.float32))
    return jnp.sum(
        jnp.abs(x.astype(jnp.float32)[:, None, :] - p[None, :, :]), axis=2)


# TODO(synk): predict/threshold/regularizers of the module are trivial argmin /
# mean / sum reductions over this kernel's output (or over sigmoid(prototypes))
# and are left to plain XLA.

if __name__ == "__main__":
    key = jax.random.PRNGKey(0)
    k_x, k_p, k_x2, k_p2, k_x3, k_p3 = jax.random.split(key, 6)

    # Case 1: small shapes implied by the module
    # (prototypes ~ torch.rand(num_classes, num_features)).
    batch, num_features, num_classes = 8, 32, 4
    prototypes = jax.random.uniform(
        k_p, (num_classes, num_features), dtype=jnp.float32)
    x = jax.random.normal(k_x, (batch, num_features), dtype=jnp.float32)
    out = jax.block_until_ready(prototype_classifier_forward(x, prototypes))
    ref = prototype_classifier_forward_ref(x, prototypes)
    assert out.shape == (batch, num_classes)
    assert jnp.allclose(out, ref, atol=1e-4, rtol=1e-5), "case 1 mismatch"

    # Case 2 (still small): exercises batch/class/feature tiling, the f-axis
    # accumulator, and the padding/slicing path.
    b2, f2, c2 = 48, 300, 130
    prototypes2 = jax.random.uniform(k_p2, (c2, f2), dtype=jnp.float32)
    x2 = jax.random.normal(k_x2, (b2, f2), dtype=jnp.float32)
    out2 = jax.block_until_ready(
        prototype_classifier_forward(
            x2, prototypes2, batch_tile=16, feature_tile=128))
    ref2 = prototype_classifier_forward_ref(x2, prototypes2)
    assert out2.shape == (b2, c2)
    assert jnp.allclose(out2, ref2, atol=1e-3, rtol=1e-4), "case 2 mismatch"

    # Case 3: bf16 inputs -> bf16 elementwise path with f32 accumulation,
    # checked against the f32 reference at a bf16-appropriate tolerance.
    b3, f3, c3 = 16, 64, 8
    prototypes3 = jax.random.uniform(
        k_p3, (c3, f3), dtype=jnp.float32).astype(jnp.bfloat16)
    x3 = jax.random.normal(k_x3, (b3, f3), dtype=jnp.float32).astype(jnp.bfloat16)
    out3 = jax.block_until_ready(prototype_classifier_forward(x3, prototypes3))
    ref3 = prototype_classifier_forward_ref(x3, prototypes3)
    assert out3.shape == (b3, c3)
    assert jnp.allclose(out3.astype(jnp.float32), ref3,
                        atol=0.5, rtol=0.05), "case 3 mismatch"

    print("KERNEL_OK")
</pallas_src>

<mosaic_0001>
module attributes {stable_mosaic.version = 11 : i64} {
  func.func @kernel(%arg0: i32, %arg1: i32, %arg2: i32, %arg3: memref<8x128xf32, #tpu.memory_space<vmem>>, %arg4: memref<128x128xf32, #tpu.memory_space<vmem>>, %arg5: memref<8x128xf32, #tpu.memory_space<vmem>>, %arg6: memref<8x128xf32, #tpu.memory_space<vmem>>) attributes {dimension_semantics = [#tpu.dimension_semantics<parallel>, #tpu.dimension_semantics<parallel>, #tpu.dimension_semantics<arbitrary>], iteration_bounds = array<i64: 1, 1, 1>, scalar_prefetch = 0 : i64, scratch_operands = 1 : i64, tpu.core_type = #tpu.core_type<tc>, window_params = [{transform_indices = @transform_0, window_bounds = array<i64: 8, 128>}, {transform_indices = @transform_1, window_bounds = array<i64: 128, 128>}, {transform_indices = @transform_2, window_bounds = array<i64: 8, 128>}]} {
    %c0_i32 = arith.constant 0 : i32
    %0 = arith.cmpi eq, %arg2, %c0_i32 : i32
    %1 = arith.extui %0 : i1 to i32
    %c0_i32_0 = arith.constant 0 : i32
    %2 = arith.cmpi ne, %1, %c0_i32_0 : i32
    scf.if %2 {
      %cst_56 = arith.constant 0.000000e+00 : f32
      %192 = vector.broadcast %cst_56 : f32 to vector<8x128xf32>
      %c0_57 = arith.constant 0 : index
      %c0_58 = arith.constant 0 : index
      %193 = vector.load %arg6[%c0_57, %c0_58] : memref<8x128xf32, #tpu.memory_space<vmem>>, vector<8x128xf32>
      tpu.vector_store %arg6[%c0_57, %c0_58], %192 {strides = array<i32>} : memref<8x128xf32, #tpu.memory_space<vmem>>, vector<8x128xf32>,
    } else {
    }
    %c0_i32_1 = arith.constant 0 : i32
    %c1_i32 = arith.constant 1 : i32
    %3 = arith.muli %c0_i32_1, %c1_i32 : i32
    %c0_i32_2 = arith.constant 0 : i32
    %4 = arith.addi %c0_i32_2, %3 : i32
    %c8_i32 = arith.constant 8 : i32
    %5 = arith.muli %4, %c8_i32 : i32
    %6 = tpu.assume_multiple %5, 8 : i32
    %cst = arith.constant 0.000000e+00 : f32
    %7 = vector.broadcast %cst : f32 to vector<8x128xf32>
    %8 = arith.index_cast %6 : i32 to index
    %c0 = arith.constant 0 : index
    %9 = vector.load %arg3[%8, %c0] : memref<8x128xf32, #tpu.memory_space<vmem>>, vector<8x8xf32>
    %c0_3 = arith.constant 0 : index
    %c0_4 = arith.constant 0 : index
    %10 = vector.load %arg4[%c0_3, %c0_4] : memref<128x128xf32, #tpu.memory_space<vmem>>, vector<8x128xf32>
    %11 = vector.shape_cast %9 : vector<8x8xf32> to vector<8x8x1xf32>
    %12 = vector.shape_cast %10 : vector<8x128xf32> to vector<1x8x128xf32>
    %13 = vector.broadcast %11 : vector<8x8x1xf32> to vector<8x8x128xf32>
    %14 = vector.broadcast %12 : vector<1x8x128xf32> to vector<8x8x128xf32>
    %15 = arith.subf %13, %14 : vector<8x8x128xf32>
    %16 = math.absf %15 : vector<8x8x128xf32>
    %cst_5 = arith.constant dense<0.000000e+00> : vector<8x128xf32>
    %17 = vector.multi_reduction <add>, %16, %cst_5 [1] : vector<8x8x128xf32> to vector<8x128xf32>
    %18 = arith.addf %7, %17 : vector<8x128xf32>
    %19 = arith.index_cast %6 : i32 to index
    %c8 = arith.constant 8 : index
    %20 = vector.load %arg3[%19, %c8] : memref<8x128xf32, #tpu.memory_space<vmem>>, vector<8x8xf32>
    %c8_6 = arith.constant 8 : index
    %c0_7 = arith.constant 0 : index
    %21 = vector.load %arg4[%c8_6, %c0_7] : memref<128x128xf32, #tpu.memory_space<vmem>>, vector<8x128xf32>
    %22 = vector.shape_cast %20 : vector<8x8xf32> to vector<8x8x1xf32>
    %23 = vector.shape_cast %21 : vector<8x128xf32> to vector<1x8x128xf32>
    %24 = vector.broadcast %22 : vector<8x8x1xf32> to vector<8x8x128xf32>
    %25 = vector.broadcast %23 : vector<1x8x128xf32> to vector<8x8x128xf32>
    %26 = arith.subf %24, %25 : vector<8x8x128xf32>
    %27 = math.absf %26 : vector<8x8x128xf32>
    %cst_8 = arith.constant dense<0.000000e+00> : vector<8x128xf32>
    %28 = vector.multi_reduction <add>, %27, %cst_8 [1] : vector<8x8x128xf32> to vector<8x128xf32>
    %29 = arith.addf %18, %28 : vector<8x128xf32>
    %30 = arith.index_cast %6 : i32 to index
    %c16 = arith.constant 16 : index
    %31 = vector.load %arg3[%30, %c16] : memref<8x128xf32, #tpu.memory_space<vmem>>, vector<8x8xf32>
    %c16_9 = arith.constant 16 : index
    %c0_10 = arith.constant 0 : index
    %32 = vector.load %arg4[%c16_9, %c0_10] : memref<128x128xf32, #tpu.memory_space<vmem>>, vector<8x128xf32>
    %33 = vector.shape_cast %31 : vector<8x8xf32> to vector<8x8x1xf32>
    %34 = vector.shape_cast %32 : vector<8x128xf32> to vector<1x8x128xf32>
    %35 = vector.broadcast %33 : vector<8x8x1xf32> to vector<8x8x128xf32>
    %36 = vector.broadcast %34 : vector<1x8x128xf32> to vector<8x8x128xf32>
    %37 = arith.subf %35, %36 : vector<8x8x128xf32>
    %38 = math.absf %37 : vector<8x8x128xf32>
    %cst_11 = arith.constant dense<0.000000e+00> : vector<8x128xf32>
    %39 = vector.multi_reduction <add>, %38, %cst_11 [1] : vector<8x8x128xf32> to vector<8x128xf32>
    %40 = arith.addf %29, %39 : vector<8x128xf32>
    %41 = arith.index_cast %6 : i32 to index
    %c24 = arith.constant 24 : index
    %42 = vector.load %arg3[%41, %c24] : memref<8x128xf32, #tpu.memory_space<vmem>>, vector<8x8xf32>
    %c24_12 = arith.constant 24 : index
    %c0_13 = arith.constant 0 : index
    %43 = vector.load %arg4[%c24_12, %c0_13] : memref<128x128xf32, #tpu.memory_space<vmem>>, vector<8x128xf32>
    %44 = vector.shape_cast %42 : vector<8x8xf32> to vector<8x8x1xf32>
    %45 = vector.shape_cast %43 : vector<8x128xf32> to vector<1x8x128xf32>
    %46 = vector.broadcast %44 : vector<8x8x1xf32> to vector<8x8x128xf32>
    %47 = vector.broadcast %45 : vector<1x8x128xf32> to vector<8x8x128xf32>
    %48 = arith.subf %46, %47 : vector<8x8x128xf32>
    %49 = math.absf %48 : vector<8x8x128xf32>
    %cst_14 = arith.constant dense<0.000000e+00> : vector<8x128xf32>
    %50 = vector.multi_reduction <add>, %49, %cst_14 [1] : vector<8x8x128xf32> to vector<8x128xf32>
    %51 = arith.addf %40, %50 : vector<8x128xf32>
    %52 = arith.index_cast %6 : i32 to index
    %c32 = arith.constant 32 : index
    %53 = vector.load %arg3[%52, %c32] : memref<8x128xf32, #tpu.memory_space<vmem>>, vector<8x8xf32>
    %c32_15 = arith.constant 32 : index
    %c0_16 = arith.constant 0 : index
    %54 = vector.load %arg4[%c32_15, %c0_16] : memref<128x128xf32, #tpu.memory_space<vmem>>, vector<8x128xf32>
    %55 = vector.shape_cast %53 : vector<8x8xf32> to vector<8x8x1xf32>
    %56 = vector.shape_cast %54 : vector<8x128xf32> to vector<1x8x128xf32>
    %57 = vector.broadcast %55 : vector<8x8x1xf32> to vector<8x8x128xf32>
    %58 = vector.broadcast %56 : vector<1x8x128xf32> to vector<8x8x128xf32>
    %59 = arith.subf %57, %58 : vector<8x8x128xf32>
    %60 = math.absf %59 : vector<8x8x128xf32>
    %cst_17 = arith.constant dense<0.000000e+00> : vector<8x128xf32>
    %61 = vector.multi_reduction <add>, %60, %cst_17 [1] : vector<8x8x128xf32> to vector<8x128xf32>
    %62 = arith.addf %51, %61 : vector<8x128xf32>
    %63 = arith.index_cast %6 : i32 to index
    %c40 = arith.constant 40 : index
    %64 = vector.load %arg3[%63, %c40] : memref<8x128xf32, #tpu.memory_space<vmem>>, vector<8x8xf32>
    %c40_18 = arith.constant 40 : index
    %c0_19 = arith.constant 0 : index
    %65 = vector.load %arg4[%c40_18, %c0_19] : memref<128x128xf32, #tpu.memory_space<vmem>>, vector<8x128xf32>
    %66 = vector.shape_cast %64 : vector<8x8xf32> to vector<8x8x1xf32>
    %67 = vector.shape_cast %65 : vector<8x128xf32> to vector<1x8x128xf32>
    %68 = vector.broadcast %66 : vector<8x8x1xf32> to vector<8x8x128xf32>
    %69 = vector.broadcast %67 : vector<1x8x128xf32> to vector<8x8x128xf32>
    %70 = arith.subf %68, %69 : vector<8x8x128xf32>
    %71 = math.absf %70 : vector<8x8x128xf32>
    %cst_20 = arith.constant dense<0.000000e+00> : vector<8x128xf32>
    %72 = vector.multi_reduction <add>, %71, %cst_20 [1] : vector<8x8x128xf32> to vector<8x128xf32>
    %73 = arith.addf %62, %72 : vector<8x128xf32>
    %74 = arith.index_cast %6 : i32 to index
    %c48 = arith.constant 48 : index
    %75 = vector.load %arg3[%74, %c48] : memref<8x128xf32, #tpu.memory_space<vmem>>, vector<8x8xf32>
    %c48_21 = arith.constant 48 : index
    %c0_22 = arith.constant 0 : index
    %76 = vector.load %arg4[%c48_21, %c0_22] : memref<128x128xf32, #tpu.memory_space<vmem>>, vector<8x128xf32>
    %77 = vector.shape_cast %75 : vector<8x8xf32> to vector<8x8x1xf32>
    %78 = vector.shape_cast %76 : vector<8x128xf32> to vector<1x8x128xf32>
    %79 = vector.broadcast %77 : vector<8x8x1xf32> to vector<8x8x128xf32>
    %80 = vector.broadcast %78 : vector<1x8x128xf32> to vector<8x8x128xf32>
    %81 = arith.subf %79, %80 : vector<8x8x128xf32>
    %82 = math.absf %81 : vector<8x8x128xf32>
    %cst_23 = arith.constant dense<0.000000e+00> : vector<8x128xf32>
    %83 = vector.multi_reduction <add>, %82, %cst_23 [1] : vector<8x8x128xf32> to vector<8x128xf32>
    %84 = arith.addf %73, %83 : vector<8x128xf32>
    %85 = arith.index_cast %6 : i32 to index
    %c56 = arith.constant 56 : index
    %86 = vector.load %arg3[%85, %c56] : memref<8x128xf32, #tpu.memory_space<vmem>>, vector<8x8xf32>
    %c56_24 = arith.constant 56 : index
    %c0_25 = arith.constant 0 : index
    %87 = vector.load %arg4[%c56_24, %c0_25] : memref<128x128xf32, #tpu.memory_space<vmem>>, vector<8x128xf32>
    %88 = vector.shape_cast %86 : vector<8x8xf32> to vector<8x8x1xf32>
    %89 = vector.shape_cast %87 : vector<8x128xf32> to vector<1x8x128xf32>
    %90 = vector.broadcast %88 : vector<8x8x1xf32> to vector<8x8x128xf32>
    %91 = vector.broadcast %89 : vector<1x8x128xf32> to vector<8x8x128xf32>
    %92 = arith.subf %90, %91 : vector<8x8x128xf32>
    %93 = math.absf %92 : vector<8x8x128xf32>
    %cst_26 = arith.constant dense<0.000000e+00> : vector<8x128xf32>
    %94 = vector.multi_reduction <add>, %93, %cst_26 [1] : vector<8x8x128xf32> to vector<8x128xf32>
    %95 = arith.addf %84, %94 : vector<8x128xf32>
    %96 = arith.index_cast %6 : i32 to index
    %c64 = arith.constant 64 : index
    %97 = vector.load %arg3[%96, %c64] : memref<8x128xf32, #tpu.memory_space<vmem>>, vector<8x8xf32>
    %c64_27 = arith.constant 64 : index
    %c0_28 = arith.constant 0 : index
    %98 = vector.load %arg4[%c64_27, %c0_28] : memref<128x128xf32, #tpu.memory_space<vmem>>, vector<8x128xf32>
    %99 = vector.shape_cast %97 : vector<8x8xf32> to vector<8x8x1xf32>
    %100 = vector.shape_cast %98 : vector<8x128xf32> to vector<1x8x128xf32>
    %101 = vector.broadcast %99 : vector<8x8x1xf32> to vector<8x8x128xf32>
    %102 = vector.broadcast %100 : vector<1x8x128xf32> to vector<8x8x128xf32>
    %103 = arith.subf %101, %102 : vector<8x8x128xf32>
    %104 = math.absf %103 : vector<8x8x128xf32>
    %cst_29 = arith.constant dense<0.000000e+00> : vector<8x128xf32>
    %105 = vector.multi_reduction <add>, %104, %cst_29 [1] : vector<8x8x128xf32> to vector<8x128xf32>
    %106 = arith.addf %95, %105 : vector<8x128xf32>
    %107 = arith.index_cast %6 : i32 to index
    %c72 = arith.constant 72 : index
    %108 = vector.load %arg3[%107, %c72] : memref<8x128xf32, #tpu.memory_space<vmem>>, vector<8x8xf32>
    %c72_30 = arith.constant 72 : index
    %c0_31 = arith.constant 0 : index
    %109 = vector.load %arg4[%c72_30, %c0_31] : memref<128x128xf32, #tpu.memory_space<vmem>>, vector<8x128xf32>
    %110 = vector.shape_cast %108 : vector<8x8xf32> to vector<8x8x1xf32>
    %111 = vector.shape_cast %109 : vector<8x128xf32> to vector<1x8x128xf32>
    %112 = vector.broadcast %110 : vector<8x8x1xf32> to vector<8x8x128xf32>
    %113 = vector.broadcast %111 : vector<1x8x128xf32> to vector<8x8x128xf32>
    %114 = arith.subf %112, %113 : vector<8x8x128xf32>
    %115 = math.absf %114 : vector<8x8x128xf32>
    %cst_32 = arith.constant dense<0.000000e+00> : vector<8x128xf32>
    %116 = vector.multi_reduction <add>, %115, %cst_32 [1] : vector<8x8x128xf32> to vector<8x128xf32>
    %117 = arith.addf %106, %116 : vector<8x128xf32>
    %118 = arith.index_cast %6 : i32 to index
    %c80 = arith.constant 80 : index
    %119 = vector.load %arg3[%118, %c80] : memref<8x128xf32, #tpu.memory_space<vmem>>, vector<8x8xf32>
    %c80_33 = arith.constant 80 : index
    %c0_34 = arith.constant 0 : index
    %120 = vector.load %arg4[%c80_33, %c0_34] : memref<128x128xf32, #tpu.memory_space<vmem>>, vector<8x128xf32>
    %121 = vector.shape_cast %119 : vector<8x8xf32> to vector<8x8x1xf32>
    %122 = vector.shape_cast %120 : vector<8x128xf32> to vector<1x8x128xf32>
    %123 = vector.broadcast %121 : vector<8x8x1xf32> to vector<8x8x128xf32>
    %124 = vector.broadcast %122 : vector<1x8x128xf32> to vector<8x8x128xf32>
    %125 = arith.subf %123, %124 : vector<8x8x128xf32>
    %126 = math.absf %125 : vector<8x8x128xf32>
    %cst_35 = arith.constant dense<0.000000e+00> : vector<8x128xf32>
    %127 = vector.multi_reduction <add>, %126, %cst_35 [1] : vector<8x8x128xf32> to vector<8x128xf32>
    %128 = arith.addf %117, %127 : vector<8x128xf32>
    %129 = arith.index_cast %6 : i32 to index
    %c88 = arith.constant 88 : index
    %130 = vector.load %arg3[%129, %c88] : memref<8x128xf32, #tpu.memory_space<vmem>>, vector<8x8xf32>
    %c88_36 = arith.constant 88 : index
    %c0_37 = arith.constant 0 : index
    %131 = vector.load %arg4[%c88_36, %c0_37] : memref<128x128xf32, #tpu.memory_space<vmem>>, vector<8x128xf32>
    %132 = vector.shape_cast %130 : vector<8x8xf32> to vector<8x8x1xf32>
    %133 = vector.shape_cast %131 : vector<8x128xf32> to vector<1x8x128xf32>
    %134 = vector.broadcast %132 : vector<8x8x1xf32> to vector<8x8x128xf32>
    %135 = vector.broadcast %133 : vector<1x8x128xf32> to vector<8x8x128xf32>
    %136 = arith.subf %134, %135 : vector<8x8x128xf32>
    %137 = math.absf %136 : vector<8x8x128xf32>
    %cst_38 = arith.constant dense<0.000000e+00> : vector<8x128xf32>
    %138 = vector.multi_reduction <add>, %137, %cst_38 [1] : vector<8x8x128xf32> to vector<8x128xf32>
    %139 = arith.addf %128, %138 : vector<8x128xf32>
    %140 = arith.index_cast %6 : i32 to index
    %c96 = arith.constant 96 : index
    %141 = vector.load %arg3[%140, %c96] : memref<8x128xf32, #tpu.memory_space<vmem>>, vector<8x8xf32>
    %c96_39 = arith.constant 96 : index
    %c0_40 = arith.constant 0 : index
    %142 = vector.load %arg4[%c96_39, %c0_40] : memref<128x128xf32, #tpu.memory_space<vmem>>, vector<8x128xf32>
    %143 = vector.shape_cast %141 : vector<8x8xf32> to vector<8x8x1xf32>
    %144 = vector.shape_cast %142 : vector<8x128xf32> to vector<1x8x128xf32>
    %145 = vector.broadcast %143 : vector<8x8x1xf32> to vector<8x8x128xf32>
    %146 = vector.broadcast %144 : vector<1x8x128xf32> to vector<8x8x128xf32>
    %147 = arith.subf %145, %146 : vector<8x8x128xf32>
    %148 = math.absf %147 : vector<8x8x128xf32>
    %cst_41 = arith.constant dense<0.000000e+00> : vector<8x128xf32>
    %149 = vector.multi_reduction <add>, %148, %cst_41 [1] : vector<8x8x128xf32> to vector<8x128xf32>
    %150 = arith.addf %139, %149 : vector<8x128xf32>
    %151 = arith.index_cast %6 : i32 to index
    %c104 = arith.constant 104 : index
    %152 = vector.load %arg3[%151, %c104] : memref<8x128xf32, #tpu.memory_space<vmem>>, vector<8x8xf32>
    %c104_42 = arith.constant 104 : index
    %c0_43 = arith.constant 0 : index
    %153 = vector.load %arg4[%c104_42, %c0_43] : memref<128x128xf32, #tpu.memory_space<vmem>>, vector<8x128xf32>
    %154 = vector.shape_cast %152 : vector<8x8xf32> to vector<8x8x1xf32>
    %155 = vector.shape_cast %153 : vector<8x128xf32> to vector<1x8x128xf32>
    %156 = vector.broadcast %154 : vector<8x8x1xf32> to vector<8x8x128xf32>
    %157 = vector.broadcast %155 : vector<1x8x128xf32> to vector<8x8x128xf32>
    %158 = arith.subf %156, %157 : vector<8x8x128xf32>
    %159 = math.absf %158 : vector<8x8x128xf32>
    %cst_44 = arith.constant dense<0.000000e+00> : vector<8x128xf32>
    %160 = vector.multi_reduction <add>, %159, %cst_44 [1] : vector<8x8x128xf32> to vector<8x128xf32>
    %161 = arith.addf %150, %160 : vector<8x128xf32>
    %162 = arith.index_cast %6 : i32 to index
    %c112 = arith.constant 112 : index
    %163 = vector.load %arg3[%162, %c112] : memref<8x128xf32, #tpu.memory_space<vmem>>, vector<8x8xf32>
    %c112_45 = arith.constant 112 : index
    %c0_46 = arith.constant 0 : index
    %164 = vector.load %arg4[%c112_45, %c0_46] : memref<128x128xf32, #tpu.memory_space<vmem>>, vector<8x128xf32>
    %165 = vector.shape_cast %163 : vector<8x8xf32> to vector<8x8x1xf32>
    %166 = vector.shape_cast %164 : vector<8x128xf32> to vector<1x8x128xf32>
    %167 = vector.broadcast %165 : vector<8x8x1xf32> to vector<8x8x128xf32>
    %168 = vector.broadcast %166 : vector<1x8x128xf32> to vector<8x8x128xf32>
    %169 = arith.subf %167, %168 : vector<8x8x128xf32>
    %170 = math.absf %169 : vector<8x8x128xf32>
    %cst_47 = arith.constant dense<0.000000e+00> : vector<8x128xf32>
    %171 = vector.multi_reduction <add>, %170, %cst_47 [1] : vector<8x8x128xf32> to vector<8x128xf32>
    %172 = arith.addf %161, %171 : vector<8x128xf32>
    %173 = arith.index_cast %6 : i32 to index
    %c120 = arith.constant 120 : index
    %174 = vector.load %arg3[%173, %c120] : memref<8x128xf32, #tpu.memory_space<vmem>>, vector<8x8xf32>
    %c120_48 = arith.constant 120 : index
    %c0_49 = arith.constant 0 : index
    %175 = vector.load %arg4[%c120_48, %c0_49] : memref<128x128xf32, #tpu.memory_space<vmem>>, vector<8x128xf32>
    %176 = vector.shape_cast %174 : vector<8x8xf32> to vector<8x8x1xf32>
    %177 = vector.shape_cast %175 : vector<8x128xf32> to vector<1x8x128xf32>
    %178 = vector.broadcast %176 : vector<8x8x1xf32> to vector<8x8x128xf32>
    %179 = vector.broadcast %177 : vector<1x8x128xf32> to vector<8x8x128xf32>
    %180 = arith.subf %178, %179 : vector<8x8x128xf32>
    %181 = math.absf %180 : vector<8x8x128xf32>
    %cst_50 = arith.constant dense<0.000000e+00> : vector<8x128xf32>
    %182 = vector.multi_reduction <add>, %181, %cst_50 [1] : vector<8x8x128xf32> to vector<8x128xf32>
    %183 = arith.addf %172, %182 : vector<8x128xf32>
    %184 = arith.index_cast %6 : i32 to index
    %c0_51 = arith.constant 0 : index
    %185 = vector.load %arg6[%184, %c0_51] : memref<8x128xf32, #tpu.memory_space<vmem>>, vector<8x128xf32>
    %186 = arith.addf %185, %183 : vector<8x128xf32>
    %187 = arith.index_cast %6 : i32 to index
    %c0_52 = arith.constant 0 : index
    %188 = vector.load %arg6[%187, %c0_52] : memref<8x128xf32, #tpu.memory_space<vmem>>, vector<8x128xf32>
    tpu.vector_store %arg6[%187, %c0_52], %186 {strides = array<i32>} : memref<8x128xf32, #tpu.memory_space<vmem>>, vector<8x128xf32>,
    %c1_i32_53 = arith.constant 1 : i32
    %c0_i32_54 = arith.constant 0 : i32
    %189 = arith.cmpi eq, %arg2, %c0_i32_54 : i32
    %190 = arith.extui %189 : i1 to i32
    %c0_i32_55 = arith.constant 0 : i32
    %191 = arith.cmpi ne, %190, %c0_i32_55 : i32
    scf.if %191 {
      %c0_56 = arith.constant 0 : index
      %c0_57 = arith.constant 0 : index
      %192 = vector.load %arg6[%c0_56, %c0_57] : memref<8x128xf32, #tpu.memory_space<vmem>>, vector<8x128xf32>
      %c0_58 = arith.constant 0 : index
      %c0_59 = arith.constant 0 : index
      %193 = vector.load %arg5[%c0_58, %c0_59] : memref<8x128xf32, #tpu.memory_space<vmem>>, vector<8x128xf32>
      tpu.vector_store %arg5[%c0_58, %c0_59], %192 {strides = array<i32>} : memref<8x128xf32, #tpu.memory_space<vmem>>, vector<8x128xf32>,
    } else {
    }
    return
  }
  func.func @transform_0(%arg0: i32, %arg1: i32, %arg2: i32) -> (i32, i32) {
    %c0_i32 = arith.constant 0 : i32
    return %arg1, %arg2 : i32, i32
  }
  func.func @transform_1(%arg0: i32, %arg1: i32, %arg2: i32) -> (i32, i32) {
    %c0_i32 = arith.constant 0 : i32
    return %arg2, %arg0 : i32, i32
  }
  func.func @transform_2(%arg0: i32, %arg1: i32, %arg2: i32) -> (i32, i32) {
    %c0_i32 = arith.constant 0 : i32
    return %arg1, %arg0 : i32, i32
  }
}

</mosaic_0001>

<bundles_post_ra>
// kernel: tpu_custom_call.1
= control target key start
LH: loop header
LB: loop body
LE: loop exit
PB: predicated region body
PF: predicated region fallthrough
CT: control target
= control target key end

     0   :  { %7 = vsyncpa [#allocation4], 0  ;;  %s2743_s0 = inlined_call_operand.hbm [shape: f32[8,128], index: 0, kind: input, shape index: {}]   ;;  %s2744_s1 = inlined_call_operand.hbm [shape: f32[128,128], index: 1, kind: input, shape index: {}]   ;;  %s2745_s2 = inlined_call_operand.hbm [shape: f32[8,128], index: 2, kind: output, shape index: {}]  }
   0x1   :  { %8 = vsyncpa [#allocation7], 0 }
   0x2   :  { %9 = vsyncpa [#allocation5], 0  ;;  %s1872_s9 = smov [#allocation3]   ;;  %s1873_s11 = smov [#allocation6]  }
   0x3   :  { %s16_s10 = sshll.u32 %s1872_s9, 4  ;;  %s25_s12 = sshll.u32 %s1873_s11, 4  ;;  %s17_s10 = int_to_ptr.vmem [resolvable:$true] %s16_s10  ;;  %s1892_s12 = int_to_ptr.vmem [resolvable:$true] %s25_s12 }
   0x4   :  { %s1800_s15 = scalar_lea.hbm %s2743_s0, 128 }
   0x5   :  { %p1801_p0 = scmp.ne.s32.totalorder %s2743_s0, %s1800_s15  ;;  %p1804_p1 = scmp.lt.u32.totalorder %s1800_s15, %s2743_s0 }
   0x7   :  { %p1806_p2 = pnand %p1804_p1, %p1801_p0 }
   0x9   :  { %1809 = shalt.err (!%p1806_p2)
}
   0xa   :  { %s1810_s20 = scalar_lea.vmem %s17_s10, 128  ;;  %p1815_p4 = scmp.lt.s32.totalorder %s17_s10, %s17_s10 }
   0xb   :  { %p1811_p3 = scmp.ne.s32.totalorder %s17_s10, %s1810_s20  ;;  %p1816_p5 = scmp.lt.s32.totalorder %s1810_s20, %s1810_s20 }
   0xd   :  { %p1817_p6 = por %p1816_p5, %p1815_p4 }
   0xf   :  { %p1818_p7 = pnand %p1817_p6, %p1811_p3 }
  0x11   :  { %1821 = shalt.err (!%p1818_p7)
}
  0x12   :  { %19 = dma.hbm_to_vmem [thread:$0]  %s2743_s0, 128, %s17_s10, [#allocation4]  }
  0x13   :  { %s1822_s25 = scalar_lea.hbm %s2744_s1, 2048 }
  0x14   :  { %p1823_p8 = scmp.ne.s32.totalorder %s2744_s1, %s1822_s25  ;;  %p1826_p9 = scmp.lt.u32.totalorder %s1822_s25, %s2744_s1 }
  0x16   :  { %p1828_p10 = pnand %p1826_p9, %p1823_p8 }
  0x18   :  { %1831 = shalt.err (!%p1828_p10)
}
  0x19   :  { %s1832_s30 = scalar_lea.vmem %s1892_s12, 2048  ;;  %p1837_p12 = scmp.lt.s32.totalorder %s1892_s12, %s1892_s12 }
  0x1a   :  { %p1833_p11 = scmp.ne.s32.totalorder %s1892_s12, %s1832_s30  ;;  %p1838_p13 = scmp.lt.s32.totalorder %s1832_s30, %s1832_s30 }
  0x1c   :  { %p1839_p0 = por %p1838_p13, %p1837_p12 }
  0x1e   :  { %p1840_p1 = pnand %p1839_p0, %p1833_p11 }
  0x20   :  { %1843 = shalt.err (!%p1840_p1)
}
  0x21   :  { %s1874_s0 = smov 128   ;;  %s1875_s3 = smov 8  }
  0x22   :  { %31 = dma.hbm_to_vmem [thread:$0]  %s2744_s1, 2048, %s1892_s12, [#allocation7], %s1874_s0, %s1874_s0, %s1875_s3  }
  0x23   :  { %1866 = dma.done.wait [#allocation4], 128  }
  0x24   :  { %1867 = vsyncadd [#allocation4], 4294967168 }
  0x25   :  { %1868 = dma.done.wait [#allocation7], 2048  }
  0x26   :  { %1869 = vsyncadd [#allocation7], 4294965248  ;;  %v45_v0 = vlaneseq  ;;  %v43_v6 = vld [vmem:[#allocation3] sm:$0xff]  ;;  %v44_v19 = vld [vmem:[#allocation6] sm:$0xff]  ;;  %vm1757_vm0 = vcmask 1041409   ;;  %vm1759_vm1 = vcmask 1042434  }
  0x27   :  { %v2005_v60 = vld [vmem:[#allocation6 + $0x8] sm:$0xff]  ;;  %vm1761_vm2 = vcmask 1043459   ;;  %vm1763_vm3 = vcmask 1044484   ;;  %vm1765_vm4 = vcmask 1045509   ;;  %vm1767_vm5 = vcmask 1046534   ;;  %s1876_s1 = smov [#allocation8]  }
  0x28   :  { %v46_v1 = vshrl.u32 %v45_v0, 7  ;;  %s1785_s6 = sshll.u32 %s1876_s1, 4  ;;  %vm1769_vm6 = vcmask 1047559   ;;  %s1786_s6 = int_to_ptr.vmem [resolvable:$true] %s1785_s6 }
  0x29   :  { %s1844_s7 = scalar_lea.vmem %s1786_s6, 128  ;;  %p1849_p3 = scmp.lt.s32.totalorder %s1786_s6, %s1786_s6 }
  0x2a   :  { %v61_v2 = vsub.s32 2, %v46_v1  ;;  %v47_v3 = vsub.s32 0, %v46_v1  ;;  %v68_v4 = vsub.s32 3, %v46_v1  ;;  %v54_v5 = vsub.s32 1, %v46_v1  ;;  %p1845_p2 = scmp.ne.s32.totalorder %s1786_s6, %s1844_s7  ;;  %p1850_p4 = scmp.lt.s32.totalorder %s1844_s7, %s1844_s7 }
  0x2b   :  { %v82_v11 = vsub.s32 5, %v46_v1  ;;  %v75_v12 = vsub.s32 4, %v46_v1  ;;  %v96_v15 = vsub.s32 7, %v46_v1  ;;  %v89_v16 = vsub.s32 6, %v46_v1 }
  0x2c   :  { %v1923_v7 = vrot.slane %v43_v6, %v61_v2  ;;  %v1925_v8 = vrot.slane %v43_v6, %v47_v3  ;;  %v1929_v9 = vrot.slane %v43_v6, %v68_v4  ;;  %v1931_v10 = vrot.slane %v43_v6, %v54_v5  ;;  %p1851_p5 = por %p1850_p4, %p1849_p3 }
  0x2d   :  { %v1935_v13 = vrot.slane %v43_v6, %v82_v11  ;;  %v1937_v14 = vrot.slane %v43_v6, %v75_v12  ;;  %v1941_v17 = vrot.slane %v43_v6, %v96_v15  ;;  %v1943_v18 = vrot.slane %v43_v6, %v89_v16 }
  0x2e   :  { %64 = vbcast.lane.b32.xlu1 %v1923_v7, 256  ;;  %50 = vbcast.lane.b32.xlu0 %v1925_v8, 256  ;;  %p1852_p6 = pnand %p1851_p5, %p1845_p2 }
  0x32   :  { %71 = vbcast.lane.b32.xlu1 %v1929_v9, 256  ;;  %57 = vbcast.lane.b32.xlu0 %v1931_v10, 256 }
  0x36   :  { %85 = vbcast.lane.b32.xlu1 %v1935_v13, 256  ;;  %78 = vbcast.lane.b32.xlu0 %v1937_v14, 256 }
  0x3a   :  { %99 = vbcast.lane.b32.xlu1 %v1941_v17, 256  ;;  %92 = vbcast.lane.b32.xlu0 %v1943_v18, 256 }
  0x3e   :  { %180 = vbcast.lane.b32.xlu1 %v1931_v10, 264  ;;  %176 = vbcast.lane.b32.xlu0 %v1925_v8, 264 }
  0x42   :  { %188 = vbcast.lane.b32.xlu1 %v1929_v9, 264  ;;  %184 = vbcast.lane.b32.xlu0 %v1923_v7, 264 }
  0x46   :  { %196 = vbcast.lane.b32.xlu1 %v1935_v13, 264  ;;  %192 = vbcast.lane.b32.xlu0 %v1937_v14, 264 }
  0x4a   :  { %204 = vbcast.lane.b32.xlu1 %v1941_v17, 264  ;;  %200 = vbcast.lane.b32.xlu0 %v1943_v18, 264 }
  0x4e   :  { %285 = vbcast.lane.b32.xlu1 %v1931_v10, 272  ;;  %281 = vbcast.lane.b32.xlu0 %v1925_v8, 272 }
  0x52   :  { %293 = vbcast.lane.b32.xlu1 %v1929_v9, 272  ;;  %289 = vbcast.lane.b32.xlu0 %v1923_v7, 272 }
  0x56   :  { %301 = vbcast.lane.b32.xlu1 %v1935_v13, 272  ;;  %297 = vbcast.lane.b32.xlu0 %v1937_v14, 272 }
  0x5a   :  { %309 = vbcast.lane.b32.xlu1 %v1941_v17, 272  ;;  %305 = vbcast.lane.b32.xlu0 %v1943_v18, 272 }
  0x5e   :  { %390 = vbcast.lane.b32.xlu1 %v1931_v10, 280  ;;  %386 = vbcast.lane.b32.xlu0 %v1925_v8, 280 }
  0x62   :  { %398 = vbcast.lane.b32.xlu1 %v1929_v9, 280  ;;  %394 = vbcast.lane.b32.xlu0 %v1923_v7, 280 }
  0x66   :  { %406 = vbcast.lane.b32.xlu1 %v1935_v13, 280  ;;  %402 = vbcast.lane.b32.xlu0 %v1937_v14, 280 }
  0x6a   :  { %414 = vbcast.lane.b32.xlu1 %v1941_v17, 280  ;;  %410 = vbcast.lane.b32.xlu0 %v1943_v18, 280 }
  0x6e   :  { %495 = vbcast.lane.b32.xlu1 %v1931_v10, 288  ;;  %491 = vbcast.lane.b32.xlu0 %v1925_v8, 288 }
  0x72   :  { %503 = vbcast.lane.b32.xlu1 %v1929_v9, 288  ;;  %499 = vbcast.lane.b32.xlu0 %v1923_v7, 288 }
  0x76   :  { %511 = vbcast.lane.b32.xlu1 %v1935_v13, 288  ;;  %507 = vbcast.lane.b32.xlu0 %v1937_v14, 288 }
  0x7a   :  { %519 = vbcast.lane.b32.xlu1 %v1941_v17, 288  ;;  %515 = vbcast.lane.b32.xlu0 %v1943_v18, 288 }
  0x7e   :  { %600 = vbcast.lane.b32.xlu1 %v1931_v10, 296  ;;  %596 = vbcast.lane.b32.xlu0 %v1925_v8, 296 }
  0x82   :  { %608 = vbcast.lane.b32.xlu1 %v1929_v9, 296  ;;  %604 = vbcast.lane.b32.xlu0 %v1923_v7, 296 }
  0x86   :  { %616 = vbcast.lane.b32.xlu1 %v1935_v13, 296  ;;  %612 = vbcast.lane.b32.xlu0 %v1937_v14, 296 }
  0x8a   :  { %624 = vbcast.lane.b32.xlu1 %v1941_v17, 296  ;;  %620 = vbcast.lane.b32.xlu0 %v1943_v18, 296 }
  0x8e   :  { %705 = vbcast.lane.b32.xlu1 %v1931_v10, 304  ;;  %701 = vbcast.lane.b32.xlu0 %v1925_v8, 304 }
  0x92   :  { %713 = vbcast.lane.b32.xlu1 %v1929_v9, 304  ;;  %709 = vbcast.lane.b32.xlu0 %v1923_v7, 304 }
  0x96   :  { %721 = vbcast.lane.b32.xlu1 %v1935_v13, 304  ;;  %717 = vbcast.lane.b32.xlu0 %v1937_v14, 304 }
  0x9a   :  { %729 = vbcast.lane.b32.xlu1 %v1941_v17, 304  ;;  %725 = vbcast.lane.b32.xlu0 %v1943_v18, 304 }
  0x9e   :  { %810 = vbcast.lane.b32.xlu1 %v1931_v10, 312  ;;  %806 = vbcast.lane.b32.xlu0 %v1925_v8, 312 }
  0xa0   :  { %v65_v20 = vpop.permute.xlu1 %64  ;;  %v51_v21 = vpop.permute.xlu0 %50 }
  0xa1   :  { %v103_v22 = vsub.f32 %v65_v20, %v44_v19  ;;  %v101_v23 = vsub.f32 %v51_v21, %v44_v19 }
  0xa2   :  { %818 = vbcast.lane.b32.xlu1 %v1929_v9, 312  ;;  %814 = vbcast.lane.b32.xlu0 %v1923_v7, 312 }
  0xa3   :  { %v111_v24 = vand.u32 2147483647, %v103_v22  ;;  %v109_v25 = vand.u32 2147483647, %v101_v23 }
  0xa4   :  { %v72_v26 = vpop.permute.xlu1 %71  ;;  %v58_v27 = vpop.permute.xlu0 %57 }
  0xa5   :  { %v129_v28 = vrot.slane %v111_v24, 4  ;;  %v117_v29 = vrot.slane %v109_v25, 4  ;;  %v104_v30 = vsub.f32 %v72_v26, %v44_v19  ;;  %v102_v31 = vsub.f32 %v58_v27, %v44_v19 }
  0xa6   :  { %826 = vbcast.lane.b32.xlu1 %v1935_v13, 312  ;;  %822 = vbcast.lane.b32.xlu0 %v1937_v14, 312 }
  0xa7   :  { %v130_v32 = vadd.f32 %v129_v28, %v111_v24  ;;  %v118_v33 = vadd.f32 %v117_v29, %v109_v25  ;;  %v112_v34 = vand.u32 2147483647, %v104_v30  ;;  %v110_v35 = vand.u32 2147483647, %v102_v31 }
  0xa8   :  { %v86_v36 = vpop.permute.xlu1 %85  ;;  %v79_v37 = vpop.permute.xlu0 %78 }
  0xa9   :  { %v131_v38 = vrot.slane %v130_v32, 2  ;;  %v119_v39 = vrot.slane %v118_v33, 2  ;;  %v135_v40 = vrot.slane %v112_v34, 4  ;;  %v123_v41 = vrot.slane %v110_v35, 4 }
  0xaa   :  { %v106_v42 = vsub.f32 %v86_v36, %v44_v19  ;;  %v105_v43 = vsub.f32 %v79_v37, %v44_v19  ;;  %834 = vbcast.lane.b32.xlu1 %v1941_v17, 312  ;;  %830 = vbcast.lane.b32.xlu0 %v1943_v18, 312 }
  0xab   :  { %v132_v44 = vadd.f32 %v131_v38, %v130_v32  ;;  %v120_v45 = vadd.f32 %v119_v39, %v118_v33  ;;  %v136_v46 = vadd.f32 %v135_v40, %v112_v34  ;;  %v124_v47 = vadd.f32 %v123_v41, %v110_v35 }
  0xac   :  { %v114_v48 = vand.u32 2147483647, %v106_v42  ;;  %v113_v49 = vand.u32 2147483647, %v105_v43  ;;  %v100_v50 = vpop.permute.xlu1 %99  ;;  %v93_v51 = vpop.permute.xlu0 %92 }
  0xad   :  { %v133_v52 = vrot.slane %v132_v44, 1  ;;  %v121_v53 = vrot.slane %v120_v45, 1  ;;  %v137_v54 = vrot.slane %v136_v46, 2  ;;  %v125_v55 = vrot.slane %v124_v47, 2 }
  0xae   :  { %v147_v56 = vrot.slane %v114_v48, 4  ;;  %v141_v57 = vrot.slane %v113_v49, 4  ;;  %v108_v58 = vsub.f32 %v100_v50, %v44_v19  ;;  %v107_v59 = vsub.f32 %v93_v51, %v44_v19  ;;  %915 = vbcast.lane.b32.xlu1 %v1931_v10, 320  ;;  %911 = vbcast.lane.b32.xlu0 %v1925_v8, 320 }
  0xaf   :  { %v2007_v61 = vadd.f32 %v133_v52, %v132_v44  ;;  %v2009_v62 = vadd.f32 %v121_v53, %v120_v45  ;;  %v138_v63 = vadd.f32 %v137_v54, %v136_v46  ;;  %v126_v0 = vadd.f32 %v125_v55, %v124_v47 }
  0xb0   :  { %v148_v1 = vadd.f32 %v147_v56, %v114_v48  ;;  %v142_v2 = vadd.f32 %v141_v57, %v113_v49  ;;  %v116_v3 = vand.u32 2147483647, %v108_v58  ;;  %v115_v4 = vand.u32 2147483647, %v107_v59  ;;  %v181_v5 = vpop.permute.xlu1 %180  ;;  %v177_v6 = vpop.permute.xlu0 %176 }
  0xb1   :  { %v139_v11 = vrot.slane %v138_v63, 1  ;;  %v127_v12 = vrot.slane %v126_v0, 1  ;;  %v207_v15 = vsub.f32 %v181_v5, %v2005_v60  ;;  %v206_v16 = vsub.f32 %v177_v6, %v2005_v60 }
  0xb2   :  { %v149_v19 = vrot.slane %v148_v1, 2  ;;  %v143_v20 = vrot.slane %v142_v2, 2  ;;  %v159_v21 = vrot.slane %v116_v3, 4  ;;  %v153_v22 = vrot.slane %v115_v4, 4  ;;  %923 = vbcast.lane.b32.xlu1 %v1929_v9, 320  ;;  %919 = vbcast.lane.b32.xlu0 %v1923_v7, 320 }
  0xb3   :  { %v2015_v23 = vadd.f32 %v139_v11, %v138_v63  ;;  %v2017_v24 = vadd.f32 %v127_v12, %v126_v0  ;;  %v215_v25 = vand.u32 2147483647, %v207_v15  ;;  %v214_v26 = vand.u32 2147483647, %v206_v16 }
  0xb4   :  { %v150_v27 = vadd.f32 %v149_v19, %v148_v1  ;;  %v144_v28 = vadd.f32 %v143_v20, %v142_v2  ;;  %v160_v29 = vadd.f32 %v159_v21, %v116_v3  ;;  %v154_v30 = vadd.f32 %v153_v22, %v115_v4  ;;  %v189_v31 = vpop.permute.xlu1 %188  ;;  %v185_v32 = vpop.permute.xlu0 %184 }
  0xb5   :  { %v228_v33 = vrot.slane %v215_v25, 4  ;;  %v222_v34 = vrot.slane %v214_v26, 4  ;;  %v209_v35 = vsub.f32 %v189_v31, %v2005_v60  ;;  %v208_v36 = vsub.f32 %v185_v32, %v2005_v60 }
  0xb6   :  { %v151_v37 = vrot.slane %v150_v27, 1  ;;  %v145_v38 = vrot.slane %v144_v28, 1  ;;  %v161_v39 = vrot.slane %v160_v29, 2  ;;  %v155_v40 = vrot.slane %v154_v30, 2  ;;  %931 = vbcast.lane.b32.xlu1 %v1935_v13, 320  ;;  %927 = vbcast.lane.b32.xlu0 %v1937_v14, 320 }
  0xb7   :  { %v229_v41 = vadd.f32 %v228_v33, %v215_v25  ;;  %v223_v42 = vadd.f32 %v222_v34, %v214_v26  ;;  %v217_v43 = vand.u32 2147483647, %v209_v35  ;;  %v216_v44 = vand.u32 2147483647, %v208_v36  ;;  %v2039_v34 = vld [vmem:[#allocation6 + $0x10] sm:$0xff] }
  0xb8   :  { %v2023_v45 = vadd.f32 %v151_v37, %v150_v27  ;;  %v2025_v46 = vadd.f32 %v145_v38, %v144_v28  ;;  %v162_v47 = vadd.f32 %v161_v39, %v160_v29  ;;  %v156_v48 = vadd.f32 %v155_v40, %v154_v30  ;;  %v197_v49 = vpop.permute.xlu1 %196  ;;  %v193_v50 = vpop.permute.xlu0 %192 }
  0xb9   :  { %v230_v51 = vrot.slane %v229_v41, 2  ;;  %v224_v52 = vrot.slane %v223_v42, 2  ;;  %v240_v53 = vrot.slane %v217_v43, 4  ;;  %v234_v54 = vrot.slane %v216_v44, 4 }
  0xba   :  { %v163_v55 = vrot.slane %v162_v47, 1  ;;  %v157_v56 = vrot.slane %v156_v48, 1  ;;  %v211_v57 = vsub.f32 %v197_v49, %v2005_v60  ;;  %v210_v58 = vsub.f32 %v193_v50, %v2005_v60  ;;  %939 = vbcast.lane.b32.xlu1 %v1941_v17, 320  ;;  %935 = vbcast.lane.b32.xlu0 %v1943_v18, 320 }
  0xbb   :  { %v231_v59 = vadd.f32 %v230_v51, %v229_v41  ;;  %v225_v63 = vadd.f32 %v224_v52, %v223_v42  ;;  %v241_v0 = vadd.f32 %v240_v53, %v217_v43  ;;  %v235_v1 = vadd.f32 %v234_v54, %v216_v44 }
  0xbc   :  { %v2031_v2 = vadd.f32 %v163_v55, %v162_v47  ;;  %v2033_v3 = vadd.f32 %v157_v56, %v156_v48  ;;  %v219_v4 = vand.u32 2147483647, %v211_v57  ;;  %v218_v5 = vand.u32 2147483647, %v210_v58  ;;  %v205_v6 = vpop.permute.xlu1 %204  ;;  %v201_v11 = vpop.permute.xlu0 %200 }
  0xbd   :  { %v232_v12 = vrot.slane %v231_v59, 1  ;;  %v226_v15 = vrot.slane %v225_v63, 1  ;;  %v242_v16 = vrot.slane %v241_v0, 2  ;;  %v236_v19 = vrot.slane %v235_v1, 2 }
  0xbe   :  { %v252_v20 = vrot.slane %v219_v4, 4  ;;  %v246_v21 = vrot.slane %v218_v5, 4  ;;  %v213_v22 = vsub.f32 %v205_v6, %v2005_v60  ;;  %v212_v25 = vsub.f32 %v201_v11, %v2005_v60  ;;  %1020 = vbcast.lane.b32.xlu1 %v1931_v10, 328  ;;  %1016 = vbcast.lane.b32.xlu0 %v1925_v8, 328 }
  0xbf   :  { %v233_v26 = vadd.f32 %v232_v12, %v231_v59  ;;  %v227_v27 = vadd.f32 %v226_v15, %v225_v63  ;;  %v243_v28 = vadd.f32 %v242_v16, %v241_v0  ;;  %v237_v29 = vadd.f32 %v236_v19, %v235_v1 }
  0xc0   :  { %v253_v30 = vadd.f32 %v252_v20, %v219_v4  ;;  %v247_v31 = vadd.f32 %v246_v21, %v218_v5  ;;  %v221_v32 = vand.u32 2147483647, %v213_v22  ;;  %v220_v33 = vand.u32 2147483647, %v212_v25  ;;  %v286_v35 = vpop.permute.xlu1 %285  ;;  %v282_v36 = vpop.permute.xlu0 %281 }
  0xc1   :  { %v2042_v37 = vadd.f32 %v233_v26, %v2017_v24  ;;  %v2045_v60 = vadd.f32 %v227_v27, %v2009_v62  ;;  %v244_v38 = vrot.slane %v243_v28, 1  ;;  %v238_v39 = vrot.slane %v237_v29, 1 }
  0xc2   :  { %v254_v40 = vrot.slane %v253_v30, 2  ;;  %v248_v41 = vrot.slane %v247_v31, 2  ;;  %v264_v42 = vrot.slane %v221_v32, 4  ;;  %v258_v43 = vrot.slane %v220_v33, 4  ;;  %1028 = vbcast.lane.b32.xlu1 %v1929_v9, 328  ;;  %1024 = vbcast.lane.b32.xlu0 %v1923_v7, 328 }
  0xc3   :  { %v245_v44 = vadd.f32 %v244_v38, %v243_v28  ;;  %v239_v47 = vadd.f32 %v238_v39, %v237_v29  ;;  %v312_v48 = vsub.f32 %v286_v35, %v2039_v34  ;;  %v311_v24 = vsub.f32 %v282_v36, %v2039_v34 }
  0xc4   :  { %v255_v49 = vadd.f32 %v254_v40, %v253_v30  ;;  %v249_v50 = vadd.f32 %v248_v41, %v247_v31  ;;  %v265_v62 = vadd.f32 %v264_v42, %v221_v32  ;;  %v259_v51 = vadd.f32 %v258_v43, %v220_v33  ;;  %v294_v52 = vpop.permute.xlu1 %293  ;;  %v290_v53 = vpop.permute.xlu0 %289 }
  0xc5   :  { %v2052_v54 = vadd.f32 %v245_v44, %v2015_v23  ;;  %v2055_v55 = vadd.f32 %v239_v47, %v2007_v61  ;;  %v320_v56 = vand.u32 2147483647, %v312_v48  ;;  %v319_v57 = vand.u32 2147483647, %v311_v24 }
  0xc6   :  { %v256_v58 = vrot.slane %v255_v49, 1  ;;  %v250_v59 = vrot.slane %v249_v50, 1  ;;  %v266_v63 = vrot.slane %v265_v62, 2  ;;  %v260_v0 = vrot.slane %v259_v51, 2  ;;  %1036 = vbcast.lane.b32.xlu1 %v1935_v13, 328  ;;  %1032 = vbcast.lane.b32.xlu0 %v1937_v14, 328 }
  0xc7   :  { %v333_v1 = vrot.slane %v320_v56, 4  ;;  %v327_v4 = vrot.slane %v319_v57, 4  ;;  %v314_v5 = vsub.f32 %v294_v52, %v2039_v34  ;;  %v313_v23 = vsub.f32 %v290_v53, %v2039_v34 }
  0xc8   :  { %v257_v6 = vadd.f32 %v256_v58, %v255_v49  ;;  %v251_v11 = vadd.f32 %v250_v59, %v249_v50  ;;  %v267_v61 = vadd.f32 %v266_v63, %v265_v62  ;;  %v261_v12 = vadd.f32 %v260_v0, %v259_v51  ;;  %v302_v15 = vpop.permute.xlu1 %301  ;;  %v298_v16 = vpop.permute.xlu0 %297  ;;  %v2081_v0 = vld [vmem:[#allocation6 + $0x18] sm:$0xff] }
  0xc9   :  { %v334_v19 = vadd.f32 %v333_v1, %v320_v56  ;;  %v328_v20 = vadd.f32 %v327_v4, %v319_v57  ;;  %v322_v21 = vand.u32 2147483647, %v314_v5  ;;  %v321_v22 = vand.u32 2147483647, %v313_v23 }
  0xca   :  { %v2062_v25 = vadd.f32 %v257_v6, %v2023_v45  ;;  %v2065_v26 = vadd.f32 %v251_v11, %v2025_v46  ;;  %v268_v27 = vrot.slane %v267_v61, 1  ;;  %v262_v28 = vrot.slane %v261_v12, 1  ;;  %1044 = vbcast.lane.b32.xlu1 %v1941_v17, 328  ;;  %1040 = vbcast.lane.b32.xlu0 %v1943_v18, 328 }
  0xcb   :  { %v335_v29 = vrot.slane %v334_v19, 2  ;;  %v329_v30 = vrot.slane %v328_v20, 2  ;;  %v345_v31 = vrot.slane %v322_v21, 4  ;;  %v339_v32 = vrot.slane %v321_v22, 4 }
  0xcc   :  { %v269_v33 = vadd.f32 %v268_v27, %v267_v61  ;;  %v263_v35 = vadd.f32 %v262_v28, %v261_v12  ;;  %v316_v36 = vsub.f32 %v302_v15, %v2039_v34  ;;  %v315_v45 = vsub.f32 %v298_v16, %v2039_v34  ;;  %v310_v38 = vpop.permute.xlu1 %309  ;;  %v306_v39 = vpop.permute.xlu0 %305 }
  0xcd   :  { %v336_v46 = vadd.f32 %v335_v29, %v334_v19  ;;  %v330_v40 = vadd.f32 %v329_v30, %v328_v20  ;;  %v346_v41 = vadd.f32 %v345_v31, %v322_v21  ;;  %v340_v42 = vadd.f32 %v339_v32, %v321_v22 }
  0xce   :  { %v2072_v43 = vadd.f32 %v269_v33, %v2031_v2  ;;  %v2075_v44 = vadd.f32 %v263_v35, %v2033_v3  ;;  %v324_v47 = vand.u32 2147483647, %v316_v36  ;;  %v323_v48 = vand.u32 2147483647, %v315_v45  ;;  %1125 = vbcast.lane.b32.xlu1 %v1931_v10, 336  ;;  %1121 = vbcast.lane.b32.xlu0 %v1925_v8, 336 }
  0xcf   :  { %v337_v24 = vrot.slane %v336_v46, 1  ;;  %v331_v49 = vrot.slane %v330_v40, 1  ;;  %v347_v50 = vrot.slane %v346_v41, 2  ;;  %v341_v62 = vrot.slane %v340_v42, 2 }
  0xd0   :  { %v357_v51 = vrot.slane %v324_v47, 4  ;;  %v351_v52 = vrot.slane %v323_v48, 4  ;;  %v318_v53 = vsub.f32 %v310_v38, %v2039_v34  ;;  %v317_v2 = vsub.f32 %v306_v39, %v2039_v34  ;;  %v391_v56 = vpop.permute.xlu1 %390  ;;  %v387_v57 = vpop.permute.xlu0 %386 }
  0xd1   :  { %v338_v3 = vadd.f32 %v337_v24, %v336_v46  ;;  %v332_v58 = vadd.f32 %v331_v49, %v330_v40  ;;  %v348_v59 = vadd.f32 %v347_v50, %v346_v41  ;;  %v342_v63 = vadd.f32 %v341_v62, %v340_v42 }
  0xd2   :  { %v358_v1 = vadd.f32 %v357_v51, %v324_v47  ;;  %v352_v4 = vadd.f32 %v351_v52, %v323_v48  ;;  %v326_v5 = vand.u32 2147483647, %v318_v53  ;;  %v325_v23 = vand.u32 2147483647, %v317_v2  ;;  %1133 = vbcast.lane.b32.xlu1 %v1929_v9, 336  ;;  %1129 = vbcast.lane.b32.xlu0 %v1923_v7, 336 }
  0xd3   :  { %v2086_v6 = vadd.f32 %v338_v3, %v2042_v37  ;;  %v2089_v34 = vadd.f32 %v332_v58, %v2045_v60  ;;  %v349_v11 = vrot.slane %v348_v59, 1  ;;  %v343_v61 = vrot.slane %v342_v63, 1 }
  0xd4   :  { %v359_v12 = vrot.slane %v358_v1, 2  ;;  %v353_v15 = vrot.slane %v352_v4, 2  ;;  %v369_v16 = vrot.slane %v326_v5, 4  ;;  %v363_v19 = vrot.slane %v325_v23, 4  ;;  %v399_v20 = vpop.permute.xlu1 %398  ;;  %v395_v21 = vpop.permute.xlu0 %394 }
  0xd5   :  { %v350_v22 = vadd.f32 %v349_v11, %v348_v59  ;;  %v344_v27 = vadd.f32 %v343_v61, %v342_v63  ;;  %v417_v28 = vsub.f32 %v391_v56, %v2081_v0  ;;  %v416_v29 = vsub.f32 %v387_v57, %v2081_v0 }
  0xd6   :  { %v360_v30 = vadd.f32 %v359_v12, %v358_v1  ;;  %v354_v37 = vadd.f32 %v353_v15, %v352_v4  ;;  %v370_v31 = vadd.f32 %v369_v16, %v326_v5  ;;  %v364_v32 = vadd.f32 %v363_v19, %v325_v23  ;;  %1230 = vbcast.lane.b32.xlu1 %v1931_v10, 344 }
  0xd7   :  { %v2095_v60 = vadd.f32 %v350_v22, %v2052_v54  ;;  %v2098_v33 = vadd.f32 %v344_v27, %v2055_v55  ;;  %v425_v35 = vand.u32 2147483647, %v417_v28  ;;  %v424_v36 = vand.u32 2147483647, %v416_v29  ;;  %1226 = vbcast.lane.b32.xlu0 %v1925_v8, 344 }
  0xd8   :  { %v361_v45 = vrot.slane %v360_v30, 1  ;;  %v355_v38 = vrot.slane %v354_v37, 1  ;;  %v371_v39 = vrot.slane %v370_v31, 2  ;;  %v365_v46 = vrot.slane %v364_v32, 2  ;;  %v407_v40 = vpop.permute.xlu1 %406  ;;  %v403_v41 = vpop.permute.xlu0 %402 }
  0xd9   :  { %v438_v42 = vrot.slane %v425_v35, 4  ;;  %v432_v47 = vrot.slane %v424_v36, 4  ;;  %v419_v48 = vsub.f32 %v399_v20, %v2081_v0  ;;  %v418_v54 = vsub.f32 %v395_v21, %v2081_v0 }
  0xda   :  { %v362_v24 = vadd.f32 %v361_v45, %v360_v30  ;;  %v356_v49 = vadd.f32 %v355_v38, %v354_v37  ;;  %v372_v55 = vadd.f32 %v371_v39, %v370_v31  ;;  %v366_v50 = vadd.f32 %v365_v46, %v364_v32  ;;  %1234 = vbcast.lane.b32.xlu1 %v1923_v7, 344 }
  0xdb   :  { %v439_v62 = vadd.f32 %v438_v42, %v425_v35  ;;  %v433_v51 = vadd.f32 %v432_v47, %v424_v36  ;;  %v427_v52 = vand.u32 2147483647, %v419_v48  ;;  %v426_v53 = vand.u32 2147483647, %v418_v54  ;;  %1137 = vbcast.lane.b32.xlu0 %v1937_v14, 336  ;;  %v2125_v47 = vld [vmem:[#allocation6 + $0x20] sm:$0xff] }
  0xdc   :  { %v2106_v2 = vadd.f32 %v362_v24, %v2062_v25  ;;  %v2109_v56 = vadd.f32 %v356_v49, %v2065_v26  ;;  %v373_v57 = vrot.slane %v372_v55, 1  ;;  %v367_v3 = vrot.slane %v366_v50, 1  ;;  %v415_v58 = vpop.permute.xlu1 %414  ;;  %v411_v59 = vpop.permute.xlu0 %410 }
  0xdd   :  { %v440_v63 = vrot.slane %v439_v62, 2  ;;  %v434_v1 = vrot.slane %v433_v51, 2  ;;  %v450_v4 = vrot.slane %v427_v52, 4  ;;  %v444_v5 = vrot.slane %v426_v53, 4 }
  0xde   :  { %v374_v23 = vadd.f32 %v373_v57, %v372_v55  ;;  %v368_v11 = vadd.f32 %v367_v3, %v366_v50  ;;  %v421_v61 = vsub.f32 %v407_v40, %v2081_v0  ;;  %v420_v12 = vsub.f32 %v403_v41, %v2081_v0  ;;  %1238 = vbcast.lane.b32.xlu1 %v1929_v9, 344 }
  0xdf   :  { %v441_v25 = vadd.f32 %v440_v63, %v439_v62  ;;  %v435_v15 = vadd.f32 %v434_v1, %v433_v51  ;;  %v451_v26 = vadd.f32 %v450_v4, %v427_v52  ;;  %v445_v16 = vadd.f32 %v444_v5, %v426_v53  ;;  %1141 = vbcast.lane.b32.xlu0 %v1935_v13, 336 }
  0xe0   :  { %v2116_v19 = vadd.f32 %v374_v23, %v2072_v43  ;;  %v2119_v20 = vadd.f32 %v368_v11, %v2075_v44  ;;  %v429_v21 = vand.u32 2147483647, %v421_v61  ;;  %v428_v22 = vand.u32 2147483647, %v420_v12  ;;  %v496_v27 = vpop.permute.xlu1 %495  ;;  %v492_v28 = vpop.permute.xlu0 %491 }
  0xe1   :  { %v442_v29 = vrot.slane %v441_v25, 1  ;;  %v436_v30 = vrot.slane %v435_v15, 1  ;;  %v452_v37 = vrot.slane %v451_v26, 2  ;;  %v446_v31 = vrot.slane %v445_v16, 2 }
  0xe2   :  { %v462_v32 = vrot.slane %v429_v21, 4  ;;  %v456_v35 = vrot.slane %v428_v22, 4  ;;  %v423_v36 = vsub.f32 %v415_v58, %v2081_v0  ;;  %v422_v45 = vsub.f32 %v411_v59, %v2081_v0  ;;  %1335 = vbcast.lane.b32.xlu1 %v1931_v10, 352 }
  0xe3   :  { %v443_v43 = vadd.f32 %v442_v29, %v441_v25  ;;  %v437_v38 = vadd.f32 %v436_v30, %v435_v15  ;;  %v453_v44 = vadd.f32 %v452_v37, %v451_v26  ;;  %v447_v39 = vadd.f32 %v446_v31, %v445_v16  ;;  %1331 = vbcast.lane.b32.xlu0 %v1925_v8, 352 }
  0xe4   :  { %v463_v46 = vadd.f32 %v462_v32, %v429_v21  ;;  %v457_v40 = vadd.f32 %v456_v35, %v428_v22  ;;  %v431_v41 = vand.u32 2147483647, %v423_v36  ;;  %v430_v42 = vand.u32 2147483647, %v422_v45  ;;  %v504_v48 = vpop.permute.xlu1 %503  ;;  %v500_v54 = vpop.permute.xlu0 %499 }
  0xe5   :  { %v2128_v24 = vadd.f32 %v443_v43, %v2086_v6  ;;  %v2131_v0 = vadd.f32 %v437_v38, %v2089_v34  ;;  %v454_v49 = vrot.slane %v453_v44, 1  ;;  %v448_v55 = vrot.slane %v447_v39, 1 }
  0xe6   :  { %v464_v50 = vrot.slane %v463_v46, 2  ;;  %v458_v62 = vrot.slane %v457_v40, 2  ;;  %v474_v51 = vrot.slane %v431_v41, 4  ;;  %v468_v52 = vrot.slane %v430_v42, 4  ;;  %1242 = vbcast.lane.b32.xlu1 %v1937_v14, 344 }
  0xe7   :  { %v455_v53 = vadd.f32 %v454_v49, %v453_v44  ;;  %v449_v57 = vadd.f32 %v448_v55, %v447_v39  ;;  %v522_v3 = vsub.f32 %v496_v27, %v2125_v47  ;;  %v521_v58 = vsub.f32 %v492_v28, %v2125_v47  ;;  %1145 = vbcast.lane.b32.xlu0 %v1943_v18, 336 }
  0xe8   :  { %v465_v6 = vadd.f32 %v464_v50, %v463_v46  ;;  %v459_v59 = vadd.f32 %v458_v62, %v457_v40  ;;  %v475_v34 = vadd.f32 %v474_v51, %v431_v41  ;;  %v469_v63 = vadd.f32 %v468_v52, %v430_v42  ;;  %v512_v1 = vpop.permute.xlu1 %511  ;;  %v508_v4 = vpop.permute.xlu0 %507 }
  0xe9   :  { %v2138_v5 = vadd.f32 %v455_v53, %v2095_v60  ;;  %v2141_v23 = vadd.f32 %v449_v57, %v2098_v33  ;;  %v530_v11 = vand.u32 2147483647, %v522_v3  ;;  %v529_v61 = vand.u32 2147483647, %v521_v58 }
  0xea   :  { %v466_v12 = vrot.slane %v465_v6, 1  ;;  %v460_v25 = vrot.slane %v459_v59, 1  ;;  %v476_v15 = vrot.slane %v475_v34, 2  ;;  %v470_v26 = vrot.slane %v469_v63, 2  ;;  %1149 = vbcast.lane.b32.xlu1 %v1941_v17, 336 }
  0xeb   :  { %v543_v16 = vrot.slane %v530_v11, 4  ;;  %v537_v21 = vrot.slane %v529_v61, 4  ;;  %v524_v22 = vsub.f32 %v504_v48, %v2125_v47  ;;  %v523_v27 = vsub.f32 %v500_v54, %v2125_v47  ;;  %1339 = vbcast.lane.b32.xlu0 %v1923_v7, 352 }
  0xec   :  { %v467_v60 = vadd.f32 %v466_v12, %v465_v6  ;;  %v461_v28 = vadd.f32 %v460_v25, %v459_v59  ;;  %v477_v33 = vadd.f32 %v476_v15, %v475_v34  ;;  %v471_v29 = vadd.f32 %v470_v26, %v469_v63  ;;  %v520_v30 = vpop.permute.xlu1 %519  ;;  %v516_v37 = vpop.permute.xlu0 %515 }
  0xed   :  { %v544_v31 = vadd.f32 %v543_v16, %v530_v11  ;;  %v538_v32 = vadd.f32 %v537_v21, %v529_v61  ;;  %v532_v35 = vand.u32 2147483647, %v524_v22  ;;  %v531_v36 = vand.u32 2147483647, %v523_v27  ;;  %v2167_v27 = vld [vmem:[#allocation6 + $0x28] sm:$0xff] }
  0xee   :  { %v2148_v45 = vadd.f32 %v467_v60, %v2106_v2  ;;  %v2151_v43 = vadd.f32 %v461_v28, %v2109_v56  ;;  %v478_v38 = vrot.slane %v477_v33, 1  ;;  %v472_v44 = vrot.slane %v471_v29, 1  ;;  %1343 = vbcast.lane.b32.xlu1 %v1929_v9, 352 }
  0xef   :  { %v545_v39 = vrot.slane %v544_v31, 2  ;;  %v539_v46 = vrot.slane %v538_v32, 2  ;;  %v555_v40 = vrot.slane %v532_v35, 4  ;;  %v549_v41 = vrot.slane %v531_v36, 4  ;;  %1246 = vbcast.lane.b32.xlu0 %v1935_v13, 344 }
  0xf0   :  { %v479_v42 = vadd.f32 %v478_v38, %v477_v33  ;;  %v473_v48 = vadd.f32 %v472_v44, %v471_v29  ;;  %v526_v54 = vsub.f32 %v512_v1, %v2125_v47  ;;  %v525_v2 = vsub.f32 %v508_v4, %v2125_v47  ;;  %v601_v49 = vpop.permute.xlu1 %600  ;;  %v597_v55 = vpop.permute.xlu0 %596 }
  0xf1   :  { %v546_v56 = vadd.f32 %v545_v39, %v544_v31  ;;  %v540_v50 = vadd.f32 %v539_v46, %v538_v32  ;;  %v556_v62 = vadd.f32 %v555_v40, %v532_v35  ;;  %v550_v51 = vadd.f32 %v549_v41, %v531_v36 }
  0xf2   :  { %v2158_v52 = vadd.f32 %v479_v42, %v2116_v19  ;;  %v2161_v53 = vadd.f32 %v473_v48, %v2119_v20  ;;  %v534_v57 = vand.u32 2147483647, %v526_v54  ;;  %v533_v3 = vand.u32 2147483647, %v525_v2  ;;  %1440 = vbcast.lane.b32.xlu1 %v1931_v10, 360 }
  0xf3   :  { %v547_v58 = vrot.slane %v546_v56, 1  ;;  %v541_v6 = vrot.slane %v540_v50, 1  ;;  %v557_v59 = vrot.slane %v556_v62, 2  ;;  %v551_v34 = vrot.slane %v550_v51, 2  ;;  %1436 = vbcast.lane.b32.xlu0 %v1925_v8, 360 }
  0xf4   :  { %v567_v63 = vrot.slane %v534_v57, 4  ;;  %v561_v1 = vrot.slane %v533_v3, 4  ;;  %v528_v4 = vsub.f32 %v520_v30, %v2125_v47  ;;  %v527_v19 = vsub.f32 %v516_v37, %v2125_v47  ;;  %v609_v11 = vpop.permute.xlu1 %608  ;;  %v605_v61 = vpop.permute.xlu0 %604 }
  0xf5   :  { %v548_v20 = vadd.f32 %v547_v58, %v546_v56  ;;  %v542_v12 = vadd.f32 %v541_v6, %v540_v50  ;;  %v558_v25 = vadd.f32 %v557_v59, %v556_v62  ;;  %v552_v15 = vadd.f32 %v551_v34, %v550_v51 }
  0xf6   :  { %v568_v26 = vadd.f32 %v567_v63, %v534_v57  ;;  %v562_v16 = vadd.f32 %v561_v1, %v533_v3  ;;  %v536_v21 = vand.u32 2147483647, %v528_v4  ;;  %v535_v22 = vand.u32 2147483647, %v527_v19  ;;  %1347 = vbcast.lane.b32.xlu1 %v1937_v14, 352 }
  0xf7   :  { %v2171_v60 = vadd.f32 %v548_v20, %v2128_v24  ;;  %v2174_v28 = vadd.f32 %v542_v12, %v2131_v0  ;;  %v559_v47 = vrot.slane %v558_v25, 1  ;;  %v553_v33 = vrot.slane %v552_v15, 1  ;;  %1250 = vbcast.lane.b32.xlu0 %v1943_v18, 344 }
  0xf8   :  { %v569_v29 = vrot.slane %v568_v26, 2  ;;  %v563_v30 = vrot.slane %v562_v16, 2  ;;  %v579_v37 = vrot.slane %v536_v21, 4  ;;  %v573_v31 = vrot.slane %v535_v22, 4  ;;  %v617_v32 = vpop.permute.xlu1 %616  ;;  %v613_v35 = vpop.permute.xlu0 %612 }
  0xf9   :  { %v560_v36 = vadd.f32 %v559_v47, %v558_v25  ;;  %v554_v38 = vadd.f32 %v553_v33, %v552_v15  ;;  %v627_v44 = vsub.f32 %v601_v49, %v2167_v27  ;;  %v626_v24 = vsub.f32 %v597_v55, %v2167_v27 }
  0xfa   :  { %v570_v39 = vadd.f32 %v569_v29, %v568_v26  ;;  %v564_v46 = vadd.f32 %v563_v30, %v562_v16  ;;  %v580_v0 = vadd.f32 %v579_v37, %v536_v21  ;;  %v574_v40 = vadd.f32 %v573_v31, %v535_v22  ;;  %1254 = vbcast.lane.b32.xlu1 %v1941_v17, 344 }
  0xfb   :  { %v2181_v41 = vadd.f32 %v560_v36, %v2138_v5  ;;  %v2184_v42 = vadd.f32 %v554_v38, %v2141_v23  ;;  %v635_v48 = vand.u32 2147483647, %v627_v44  ;;  %v634_v54 = vand.u32 2147483647, %v626_v24  ;;  %1444 = vbcast.lane.b32.xlu0 %v1923_v7, 360 }
  0xfc   :  { %v571_v2 = vrot.slane %v570_v39, 1  ;;  %v565_v49 = vrot.slane %v564_v46, 1  ;;  %v581_v56 = vrot.slane %v580_v0, 2  ;;  %v575_v55 = vrot.slane %v574_v40, 2  ;;  %v625_v50 = vpop.permute.xlu1 %624  ;;  %v621_v62 = vpop.permute.xlu0 %620 }
  0xfd   :  { %v648_v51 = vrot.slane %v635_v48, 4  ;;  %v642_v57 = vrot.slane %v634_v54, 4  ;;  %v629_v3 = vsub.f32 %v609_v11, %v2167_v27  ;;  %v628_v5 = vsub.f32 %v605_v61, %v2167_v27 }
  0xfe   :  { %v572_v58 = vadd.f32 %v571_v2, %v570_v39  ;;  %v566_v6 = vadd.f32 %v565_v49, %v564_v46  ;;  %v582_v23 = vadd.f32 %v581_v56, %v580_v0  ;;  %v576_v59 = vadd.f32 %v575_v55, %v574_v40  ;;  %1448 = vbcast.lane.b32.xlu1 %v1929_v9, 360 }
  0xff   :  { %v649_v34 = vadd.f32 %v648_v51, %v635_v48  ;;  %v643_v63 = vadd.f32 %v642_v57, %v634_v54  ;;  %v637_v1 = vand.u32 2147483647, %v629_v3  ;;  %v636_v4 = vand.u32 2147483647, %v628_v5  ;;  %1351 = vbcast.lane.b32.xlu0 %v1935_v13, 352  ;;  %v2219_v5 = vld [vmem:[#allocation6 + $0x30] sm:$0xff] }
 0x100   :  { %v2192_v19 = vadd.f32 %v572_v58, %v2148_v45  ;;  %v2195_v20 = vadd.f32 %v566_v6, %v2151_v43  ;;  %v583_v11 = vrot.slane %v582_v23, 1  ;;  %v577_v61 = vrot.slane %v576_v59, 1  ;;  %v2197_v12 = vpop.permute.xlu1 %705  ;;  %v2199_v25 = vpop.permute.xlu0 %701 }
 0x101   :  { %v650_v15 = vrot.slane %v649_v34, 2  ;;  %v644_v26 = vrot.slane %v643_v63, 2  ;;  %v660_v16 = vrot.slane %v637_v1, 4  ;;  %v654_v21 = vrot.slane %v636_v4, 4 }
 0x102   :  { %v584_v22 = vadd.f32 %v583_v11, %v582_v23  ;;  %v578_v47 = vadd.f32 %v577_v61, %v576_v59  ;;  %v631_v33 = vsub.f32 %v617_v32, %v2167_v27  ;;  %v630_v45 = vsub.f32 %v613_v35, %v2167_v27  ;;  %1545 = vbcast.lane.b32.xlu1 %v1931_v10, 368 }
 0x103   :  { %v651_v43 = vadd.f32 %v650_v15, %v649_v34  ;;  %v645_v29 = vadd.f32 %v644_v26, %v643_v63  ;;  %v661_v30 = vadd.f32 %v660_v16, %v637_v1  ;;  %v655_v37 = vadd.f32 %v654_v21, %v636_v4  ;;  %1541 = vbcast.lane.b32.xlu0 %v1925_v8, 368 }
 0x104   :  { %v2206_v31 = vadd.f32 %v584_v22, %v2158_v52  ;;  %v2209_v36 = vadd.f32 %v578_v47, %v2161_v53  ;;  %v639_v38 = vand.u32 2147483647, %v631_v33  ;;  %v638_v44 = vand.u32 2147483647, %v630_v45  ;;  %v2211_v24 = vpop.permute.xlu1 %713  ;;  %v2213_v32 = vpop.permute.xlu0 %709 }
 0x105   :  { %v652_v35 = vrot.slane %v651_v43, 1  ;;  %v646_v39 = vrot.slane %v645_v29, 1  ;;  %v662_v46 = vrot.slane %v661_v30, 2  ;;  %v656_v0 = vrot.slane %v655_v37, 2 }
 0x106   :  { %v672_v40 = vrot.slane %v639_v38, 4  ;;  %v666_v48 = vrot.slane %v638_v44, 4  ;;  %v633_v54 = vsub.f32 %v625_v50, %v2167_v27  ;;  %v632_v52 = vsub.f32 %v621_v62, %v2167_v27  ;;  %1452 = vbcast.lane.b32.xlu1 %v1937_v14, 360 }
 0x107   :  { %v653_v53 = vadd.f32 %v652_v35, %v651_v43  ;;  %v647_v2 = vadd.f32 %v646_v39, %v645_v29  ;;  %v663_v49 = vadd.f32 %v662_v46, %v661_v30  ;;  %v657_v56 = vadd.f32 %v656_v0, %v655_v37  ;;  %1355 = vbcast.lane.b32.xlu0 %v1943_v18, 352 }
 0x108   :  { %v673_v55 = vadd.f32 %v672_v40, %v639_v38  ;;  %v667_v51 = vadd.f32 %v666_v48, %v638_v44  ;;  %v641_v57 = vand.u32 2147483647, %v633_v54  ;;  %v640_v3 = vand.u32 2147483647, %v632_v52  ;;  %v2221_v58 = vpop.permute.xlu1 %721  ;;  %v2223_v6 = vpop.permute.xlu0 %717 }
 0x109   :  { %v2226_v27 = vadd.f32 %v653_v53, %v2171_v60  ;;  %v2229_v50 = vadd.f32 %v647_v2, %v2174_v28  ;;  %v664_v62 = vrot.slane %v663_v49, 1  ;;  %v658_v23 = vrot.slane %v657_v56, 1 }
 0x10a   :  { %v674_v59 = vrot.slane %v673_v55, 2  ;;  %v668_v34 = vrot.slane %v667_v51, 2  ;;  %v684_v63 = vrot.slane %v641_v57, 4  ;;  %v678_v1 = vrot.slane %v640_v3, 4  ;;  %1359 = vbcast.lane.b32.xlu1 %v1941_v17, 352 }
 0x10b   :  { %v665_v4 = vadd.f32 %v664_v62, %v663_v49  ;;  %v659_v11 = vadd.f32 %v658_v23, %v657_v56  ;;  %v732_v61 = vsub.f32 %v2197_v12, %v2219_v5  ;;  %v731_v60 = vsub.f32 %v2199_v25, %v2219_v5  ;;  %1549 = vbcast.lane.b32.xlu0 %v1923_v7, 368 }
 0x10c   :  { %v675_v28 = vadd.f32 %v674_v59, %v673_v55  ;;  %v669_v15 = vadd.f32 %v668_v34, %v667_v51  ;;  %v685_v26 = vadd.f32 %v684_v63, %v641_v57  ;;  %v679_v16 = vadd.f32 %v678_v1, %v640_v3  ;;  %v2237_v21 = vpop.permute.xlu1 %729  ;;  %v2239_v22 = vpop.permute.xlu0 %725 }
 0x10d   :  { %v2242_v47 = vadd.f32 %v665_v4, %v2181_v41  ;;  %v2245_v33 = vadd.f32 %v659_v11, %v2184_v42  ;;  %v740_v12 = vand.u32 2147483647, %v732_v61  ;;  %v739_v45 = vand.u32 2147483647, %v731_v60 }
 0x10e   :  { %v676_v43 = vrot.slane %v675_v28, 1  ;;  %v670_v25 = vrot.slane %v669_v15, 1  ;;  %v686_v29 = vrot.slane %v685_v26, 2  ;;  %v680_v30 = vrot.slane %v679_v16, 2  ;;  %1553 = vbcast.lane.b32.xlu1 %v1929_v9, 368 }
 0x10f   :  { %v753_v37 = vrot.slane %v740_v12, 4  ;;  %v747_v38 = vrot.slane %v739_v45, 4  ;;  %v734_v44 = vsub.f32 %v2211_v24, %v2219_v5  ;;  %v733_v41 = vsub.f32 %v2213_v32, %v2219_v5  ;;  %1456 = vbcast.lane.b32.xlu0 %v1935_v13, 360 }
 0x110   :  { %v677_v42 = vadd.f32 %v676_v43, %v675_v28  ;;  %v671_v35 = vadd.f32 %v670_v25, %v669_v15  ;;  %v687_v39 = vadd.f32 %v686_v29, %v685_v26  ;;  %v681_v46 = vadd.f32 %v680_v30, %v679_v16  ;;  %v2253_v0 = vpop.permute.xlu1 %810  ;;  %v2255_v40 = vpop.permute.xlu0 %806 }
 0x111   :  { %v754_v48 = vadd.f32 %v753_v37, %v740_v12  ;;  %v748_v54 = vadd.f32 %v747_v38, %v739_v45  ;;  %v742_v52 = vand.u32 2147483647, %v734_v44  ;;  %v741_v53 = vand.u32 2147483647, %v733_v41  ;;  %v2289_v41 = vld [vmem:[#allocation6 + $0x38] sm:$0xff] }
 0x112   :  { %v2258_v2 = vadd.f32 %v677_v42, %v2192_v19  ;;  %v2261_v24 = vadd.f32 %v671_v35, %v2195_v20  ;;  %v688_v32 = vrot.slane %v687_v39, 1  ;;  %v682_v49 = vrot.slane %v681_v46, 1  ;;  %1650 = vbcast.lane.b32.xlu1 %v1931_v10, 376 }
 0x113   :  { %v755_v56 = vrot.slane %v754_v48, 2  ;;  %v749_v55 = vrot.slane %v748_v54, 2  ;;  %v765_v51 = vrot.slane %v742_v52, 4  ;;  %v759_v57 = vrot.slane %v741_v53, 4  ;;  %1646 = vbcast.lane.b32.xlu0 %v1925_v8, 376 }
 0x114   :  { %v689_v3 = vadd.f32 %v688_v32, %v687_v39  ;;  %v683_v62 = vadd.f32 %v682_v49, %v681_v46  ;;  %v736_v23 = vsub.f32 %v2221_v58, %v2219_v5  ;;  %v735_v19 = vsub.f32 %v2223_v6, %v2219_v5  ;;  %v2269_v20 = vpop.permute.xlu1 %818  ;;  %v2271_v59 = vpop.permute.xlu0 %814 }
 0x115   :  { %v756_v34 = vadd.f32 %v755_v56, %v754_v48  ;;  %v750_v10 = vadd.f32 %v749_v55, %v748_v54  ;;  %v766_v63 = vadd.f32 %v765_v51, %v742_v52  ;;  %v760_v1 = vadd.f32 %v759_v57, %v741_v53 }
 0x116   :  { %v2274_v4 = vadd.f32 %v689_v3, %v2206_v31  ;;  %v2277_v8 = vadd.f32 %v683_v62, %v2209_v36  ;;  %v744_v11 = vand.u32 2147483647, %v736_v23  ;;  %v743_v61 = vand.u32 2147483647, %v735_v19  ;;  %1557 = vbcast.lane.b32.xlu1 %v1937_v14, 368 }
 0x117   :  { %v757_v58 = vrot.slane %v756_v34, 1  ;;  %v751_v6 = vrot.slane %v750_v10, 1  ;;  %v767_v60 = vrot.slane %v766_v63, 2  ;;  %v761_v28 = vrot.slane %v760_v1, 2  ;;  %1460 = vbcast.lane.b32.xlu0 %v1943_v18, 360 }
 0x118   :  { %v777_v15 = vrot.slane %v744_v11, 4  ;;  %v771_v26 = vrot.slane %v743_v61, 4  ;;  %v738_v16 = vsub.f32 %v2237_v21, %v2219_v5  ;;  %v737_v31 = vsub.f32 %v2239_v22, %v2219_v5  ;;  %v2285_v36 = vpop.permute.xlu1 %826  ;;  %v2287_v12 = vpop.permute.xlu0 %822 }
 0x119   :  { %v758_v45 = vadd.f32 %v757_v58, %v756_v34  ;;  %v752_v43 = vadd.f32 %v751_v6, %v750_v10  ;;  %v768_v25 = vadd.f32 %v767_v60, %v766_v63  ;;  %v762_v29 = vadd.f32 %v761_v28, %v760_v1 }
 0x11a   :  { %v778_v30 = vadd.f32 %v777_v15, %v744_v11  ;;  %v772_v37 = vadd.f32 %v771_v26, %v743_v61  ;;  %v746_v38 = vand.u32 2147483647, %v738_v16  ;;  %v745_v44 = vand.u32 2147483647, %v737_v31  ;;  %1464 = vbcast.lane.b32.xlu1 %v1941_v17, 360 }
 0x11b   :  { %v2293_v21 = vadd.f32 %v758_v45, %v2226_v27  ;;  %v2296_v5 = vadd.f32 %v752_v43, %v2229_v50  ;;  %v769_v22 = vrot.slane %v768_v25, 1  ;;  %v763_v42 = vrot.slane %v762_v29, 1  ;;  %1654 = vbcast.lane.b32.xlu0 %v1923_v7, 376 }
 0x11c   :  { %v779_v35 = vrot.slane %v778_v30, 2  ;;  %v773_v39 = vrot.slane %v772_v37, 2  ;;  %v789_v46 = vrot.slane %v746_v38, 4  ;;  %v783_v48 = vrot.slane %v745_v44, 4  ;;  %v2299_v54 = vpop.permute.xlu1 %834  ;;  %v2301_v52 = vpop.permute.xlu0 %830 }
 0x11d   :  { %v770_v53 = vadd.f32 %v769_v22, %v768_v25  ;;  %v764_v32 = vadd.f32 %v763_v42, %v762_v29  ;;  %v837_v27 = vsub.f32 %v2253_v0, %v2289_v41  ;;  %v836_v50 = vsub.f32 %v2255_v40, %v2289_v41 }
 0x11e   :  { %v780_v49 = vadd.f32 %v779_v35, %v778_v30  ;;  %v774_v56 = vadd.f32 %v773_v39, %v772_v37  ;;  %v790_v55 = vadd.f32 %v789_v46, %v746_v38  ;;  %v784_v7 = vadd.f32 %v783_v48, %v745_v44  ;;  %1658 = vbcast.lane.b32.xlu1 %v1929_v9, 376 }
 0x11f   :  { %v2309_v51 = vadd.f32 %v770_v53, %v2242_v47  ;;  %v2312_v57 = vadd.f32 %v764_v32, %v2245_v33  ;;  %v845_v3 = vand.u32 2147483647, %v837_v27  ;;  %v844_v62 = vand.u32 2147483647, %v836_v50  ;;  %1561 = vbcast.lane.b32.xlu0 %v1935_v13, 368 }
 0x120   :  { %v781_v0 = vrot.slane %v780_v49, 1  ;;  %v775_v23 = vrot.slane %v774_v56, 1  ;;  %v791_v19 = vrot.slane %v790_v55, 2  ;;  %v785_v40 = vrot.slane %v784_v7, 2  ;;  %v2315_v34 = vpop.permute.xlu1 %915  ;;  %v2317_v10 = vpop.permute.xlu0 %911 }
 0x121   :  { %v858_v63 = vrot.slane %v845_v3, 4  ;;  %v852_v9 = vrot.slane %v844_v62, 4  ;;  %v839_v47 = vsub.f32 %v2269_v20, %v2289_v41  ;;  %v838_v33 = vsub.f32 %v2271_v59, %v2289_v41 }
 0x122   :  { %v782_v1 = vadd.f32 %v781_v0, %v780_v49  ;;  %v776_v11 = vadd.f32 %v775_v23, %v774_v56  ;;  %v792_v61 = vadd.f32 %v791_v19, %v790_v55  ;;  %v786_v58 = vadd.f32 %v785_v40, %v784_v7  ;;  %1662 = vbcast.lane.b32.xlu1 %v1937_v14, 376  ;;  %v2357_v40 = vld [vmem:[#allocation6 + $0x40] sm:$0xff] }
 0x123   :  { %v859_v6 = vadd.f32 %v858_v63, %v845_v3  ;;  %v853_v60 = vadd.f32 %v852_v9, %v844_v62  ;;  %v847_v28 = vand.u32 2147483647, %v839_v47  ;;  %v846_v15 = vand.u32 2147483647, %v838_v33  ;;  %1565 = vbcast.lane.b32.xlu0 %v1943_v18, 368 }
 0x124   :  { %v2326_v26 = vadd.f32 %v782_v1, %v2258_v2  ;;  %v2329_v20 = vadd.f32 %v776_v11, %v2261_v24  ;;  %v793_v16 = vrot.slane %v792_v61, 1  ;;  %v787_v59 = vrot.slane %v786_v58, 1  ;;  %v2331_v31 = vpop.permute.xlu1 %923  ;;  %v2333_v45 = vpop.permute.xlu0 %919 }
 0x125   :  { %v860_v43 = vrot.slane %v859_v6, 2  ;;  %v854_v14 = vrot.slane %v853_v60, 2  ;;  %v870_v25 = vrot.slane %v847_v28, 4  ;;  %v864_v29 = vrot.slane %v846_v15, 4 }
 0x126   :  { %v794_v30 = vadd.f32 %v793_v16, %v792_v61  ;;  %v788_v37 = vadd.f32 %v787_v59, %v786_v58  ;;  %v841_v38 = vsub.f32 %v2285_v36, %v2289_v41  ;;  %v840_v2 = vsub.f32 %v2287_v12, %v2289_v41  ;;  %1666 = vbcast.lane.b32.xlu1 %v1935_v13, 376 }
 0x127   :  { %v861_v24 = vadd.f32 %v860_v43, %v859_v6  ;;  %v855_v44 = vadd.f32 %v854_v14, %v853_v60  ;;  %v871_v22 = vadd.f32 %v870_v25, %v847_v28  ;;  %v865_v42 = vadd.f32 %v864_v29, %v846_v15  ;;  %1569 = vbcast.lane.b32.xlu0 %v1941_v17, 368 }
 0x128   :  { %v2342_v35 = vadd.f32 %v794_v30, %v2274_v4  ;;  %v2345_v39 = vadd.f32 %v788_v37, %v2277_v8  ;;  %v849_v46 = vand.u32 2147483647, %v841_v38  ;;  %v848_v48 = vand.u32 2147483647, %v840_v2  ;;  %v2347_v36 = vpop.permute.xlu1 %931  ;;  %v2349_v53 = vpop.permute.xlu0 %927 }
 0x129   :  { %v862_v12 = vrot.slane %v861_v24, 1  ;;  %v856_v13 = vrot.slane %v855_v44, 1  ;;  %v872_v32 = vrot.slane %v871_v22, 2  ;;  %v866_v27 = vrot.slane %v865_v42, 2 }
 0x12a   :  { %v882_v50 = vrot.slane %v849_v46, 4  ;;  %v876_v49 = vrot.slane %v848_v48, 4  ;;  %v843_v56 = vsub.f32 %v2299_v54, %v2289_v41  ;;  %v842_v4 = vsub.f32 %v2301_v52, %v2289_v41  ;;  %1674 = vbcast.lane.b32.xlu1 %v1941_v17, 376 }
 0x12b   :  { %v863_v8 = vadd.f32 %v862_v12, %v861_v24  ;;  %v857_v55 = vadd.f32 %v856_v13, %v855_v44  ;;  %v873_v7 = vadd.f32 %v872_v32, %v871_v22  ;;  %v867_v3 = vadd.f32 %v866_v27, %v865_v42  ;;  %1670 = vbcast.lane.b32.xlu0 %v1943_v18, 376 }
 0x12c   :  { %v883_v62 = vadd.f32 %v882_v50, %v849_v46  ;;  %v877_v0 = vadd.f32 %v876_v49, %v848_v48  ;;  %v851_v23 = vand.u32 2147483647, %v843_v56  ;;  %v850_v19 = vand.u32 2147483647, %v842_v4  ;;  %v2359_v63 = vpop.permute.xlu1 %939  ;;  %v2361_v54 = vpop.permute.xlu0 %935 }
 0x12d   :  { %v2364_v41 = vadd.f32 %v863_v8, %v2293_v21  ;;  %v2367_v17 = vadd.f32 %v857_v55, %v2296_v5  ;;  %v874_v52 = vrot.slane %v873_v7, 1  ;;  %v868_v9 = vrot.slane %v867_v3, 1 }
 0x12e   :  { %v884_v47 = vrot.slane %v883_v62, 2  ;;  %v878_v18 = vrot.slane %v877_v0, 2  ;;  %v894_v33 = vrot.slane %v851_v23, 4  ;;  %v888_v1 = vrot.slane %v850_v19, 4 }
 0x12f   :  { %v875_v11 = vadd.f32 %v874_v52, %v873_v7  ;;  %v869_v61 = vadd.f32 %v868_v9, %v867_v3  ;;  %v942_v58 = vsub.f32 %v2315_v34, %v2357_v40  ;;  %v941_v6 = vsub.f32 %v2317_v10, %v2357_v40 }
 0x130   :  { %v885_v60 = vadd.f32 %v884_v47, %v883_v62  ;;  %v879_v21 = vadd.f32 %v878_v18, %v877_v0  ;;  %v895_v28 = vadd.f32 %v894_v33, %v851_v23  ;;  %v889_v15 = vadd.f32 %v888_v1, %v850_v19  ;;  %v2373_v5 = vpop.permute.xlu1 %1020  ;;  %v2375_v16 = vpop.permute.xlu0 %1016 }
 0x131   :  { %v2378_v59 = vadd.f32 %v875_v11, %v2309_v51  ;;  %v2381_v43 = vadd.f32 %v869_v61, %v2312_v57  ;;  %v950_v14 = vand.u32 2147483647, %v942_v58  ;;  %v949_v25 = vand.u32 2147483647, %v941_v6 }
 0x132   :  { %v886_v34 = vrot.slane %v885_v60, 1  ;;  %v880_v29 = vrot.slane %v879_v21, 1  ;;  %v896_v30 = vrot.slane %v895_v28, 2  ;;  %v890_v10 = vrot.slane %v889_v15, 2 }
 0x133   :  { %v963_v37 = vrot.slane %v950_v14, 4  ;;  %v957_v38 = vrot.slane %v949_v25, 4  ;;  %v944_v2 = vsub.f32 %v2331_v31, %v2357_v40  ;;  %v943_v24 = vsub.f32 %v2333_v45, %v2357_v40 }
 0x134   :  { %v887_v44 = vadd.f32 %v886_v34, %v885_v60  ;;  %v881_v51 = vadd.f32 %v880_v29, %v879_v21  ;;  %v897_v22 = vadd.f32 %v896_v30, %v895_v28  ;;  %v891_v42 = vadd.f32 %v890_v10, %v889_v15  ;;  %v2387_v57 = vpop.permute.xlu1 %1028  ;;  %v2389_v46 = vpop.permute.xlu0 %1024  ;;  %v2419_v10 = vld [vmem:[#allocation6 + $0x48] sm:$0xff] }
 0x135   :  { %v964_v48 = vadd.f32 %v963_v37, %v950_v14  ;;  %v958_v12 = vadd.f32 %v957_v38, %v949_v25  ;;  %v952_v13 = vand.u32 2147483647, %v944_v2  ;;  %v951_v32 = vand.u32 2147483647, %v943_v24 }
 0x136   :  { %v2392_v27 = vadd.f32 %v887_v44, %v2326_v26  ;;  %v2395_v31 = vadd.f32 %v881_v51, %v2329_v20  ;;  %v898_v50 = vrot.slane %v897_v22, 1  ;;  %v892_v45 = vrot.slane %v891_v42, 1 }
 0x137   :  { %v965_v49 = vrot.slane %v964_v48, 2  ;;  %v959_v56 = vrot.slane %v958_v12, 2  ;;  %v975_v4 = vrot.slane %v952_v13, 4  ;;  %v969_v8 = vrot.slane %v951_v32, 4 }
 0x138   :  { %v899_v55 = vadd.f32 %v898_v50, %v897_v22  ;;  %v893_v7 = vadd.f32 %v892_v45, %v891_v42  ;;  %v946_v3 = vsub.f32 %v2347_v36, %v2357_v40  ;;  %v945_v62 = vsub.f32 %v2349_v53, %v2357_v40  ;;  %v2401_v0 = vpop.permute.xlu1 %1036  ;;  %v2403_v26 = vpop.permute.xlu0 %1032 }
 0x139   :  { %v966_v20 = vadd.f32 %v965_v49, %v964_v48  ;;  %v960_v23 = vadd.f32 %v959_v56, %v958_v12  ;;  %v976_v19 = vadd.f32 %v975_v4, %v952_v13  ;;  %v970_v52 = vadd.f32 %v969_v8, %v951_v32 }
 0x13a   :  { %v2406_v9 = vadd.f32 %v899_v55, %v2342_v35  ;;  %v2409_v47 = vadd.f32 %v893_v7, %v2345_v39  ;;  %v954_v18 = vand.u32 2147483647, %v946_v3  ;;  %v953_v33 = vand.u32 2147483647, %v945_v62 }
 0x13b   :  { %v967_v36 = vrot.slane %v966_v20, 1  ;;  %v961_v1 = vrot.slane %v960_v23, 1  ;;  %v977_v11 = vrot.slane %v976_v19, 2  ;;  %v971_v53 = vrot.slane %v970_v52, 2 }
 0x13c   :  { %v987_v61 = vrot.slane %v954_v18, 4  ;;  %v981_v58 = vrot.slane %v953_v33, 4  ;;  %v948_v6 = vsub.f32 %v2359_v63, %v2357_v40  ;;  %v947_v60 = vsub.f32 %v2361_v54, %v2357_v40  ;;  %v2415_v21 = vpop.permute.xlu1 %1044  ;;  %v2417_v35 = vpop.permute.xlu0 %1040 }
 0x13d   :  { %v968_v39 = vadd.f32 %v967_v36, %v966_v20  ;;  %v962_v28 = vadd.f32 %v961_v1, %v960_v23  ;;  %v978_v15 = vadd.f32 %v977_v11, %v976_v19  ;;  %v972_v14 = vadd.f32 %v971_v53, %v970_v52 }
 0x13e   :  { %v988_v25 = vadd.f32 %v987_v61, %v954_v18  ;;  %v982_v34 = vadd.f32 %v981_v58, %v953_v33  ;;  %v956_v29 = vand.u32 2147483647, %v948_v6  ;;  %v955_v30 = vand.u32 2147483647, %v947_v60 }
 0x13f   :  { %v2422_v37 = vadd.f32 %v968_v39, %v2364_v41  ;;  %v2425_v63 = vadd.f32 %v962_v28, %v2367_v17  ;;  %v979_v40 = vrot.slane %v978_v15, 1  ;;  %v973_v54 = vrot.slane %v972_v14, 1 }
 0x140   :  { %v989_v38 = vrot.slane %v988_v25, 2  ;;  %v983_v2 = vrot.slane %v982_v34, 2  ;;  %v999_v24 = vrot.slane %v956_v29, 4  ;;  %v993_v44 = vrot.slane %v955_v30, 4  ;;  %v2427_v51 = vpop.permute.xlu1 %1125  ;;  %v2429_v22 = vpop.permute.xlu0 %1121 }
 0x141   :  { %v980_v42 = vadd.f32 %v979_v40, %v978_v15  ;;  %v974_v48 = vadd.f32 %v973_v54, %v972_v14  ;;  %v1047_v12 = vsub.f32 %v2373_v5, %v2419_v10  ;;  %v1046_v41 = vsub.f32 %v2375_v16, %v2419_v10 }
 0x142   :  { %v990_v17 = vadd.f32 %v989_v38, %v988_v25  ;;  %v984_v13 = vadd.f32 %v983_v2, %v982_v34  ;;  %v1000_v32 = vadd.f32 %v999_v24, %v956_v29  ;;  %v994_v50 = vadd.f32 %v993_v44, %v955_v30 }
 0x143   :  { %v2436_v45 = vadd.f32 %v980_v42, %v2378_v59  ;;  %v2439_v49 = vadd.f32 %v974_v48, %v2381_v43  ;;  %v1055_v56 = vand.u32 2147483647, %v1047_v12  ;;  %v1054_v4 = vand.u32 2147483647, %v1046_v41 }
 0x144   :  { %v991_v8 = vrot.slane %v990_v17, 1  ;;  %v985_v55 = vrot.slane %v984_v13, 1  ;;  %v1001_v7 = vrot.slane %v1000_v32, 2  ;;  %v995_v3 = vrot.slane %v994_v50, 2  ;;  %v2441_v5 = vpop.permute.xlu1 %1133  ;;  %v2443_v62 = vpop.permute.xlu0 %1129 }
 0x145   :  { %v1068_v16 = vrot.slane %v1055_v56, 4  ;;  %v1062_v20 = vrot.slane %v1054_v4, 4  ;;  %v1049_v23 = vsub.f32 %v2387_v57, %v2419_v10  ;;  %v1048_v59 = vsub.f32 %v2389_v46, %v2419_v10 }
 0x146   :  { %v992_v43 = vadd.f32 %v991_v8, %v990_v17  ;;  %v986_v19 = vadd.f32 %v985_v55, %v984_v13  ;;  %v1002_v52 = vadd.f32 %v1001_v7, %v1000_v32  ;;  %v996_v18 = vadd.f32 %v995_v3, %v994_v50  ;;  %v2477_v3 = vld [vmem:[#allocation6 + $0x50] sm:$0xff] }
 0x147   :  { %v1069_v33 = vadd.f32 %v1068_v16, %v1055_v56  ;;  %v1063_v36 = vadd.f32 %v1062_v20, %v1054_v4  ;;  %v1057_v1 = vand.u32 2147483647, %v1049_v23  ;;  %v1056_v11 = vand.u32 2147483647, %v1048_v59 }
 0x148   :  { %v2450_v53 = vadd.f32 %v992_v43, %v2392_v27  ;;  %v2453_v61 = vadd.f32 %v986_v19, %v2395_v31  ;;  %v1003_v58 = vrot.slane %v1002_v52, 1  ;;  %v997_v6 = vrot.slane %v996_v18, 1  ;;  %v2455_v57 = vpop.permute.xlu1 %1230 }
 0x149   :  { %v1070_v60 = vrot.slane %v1069_v33, 2  ;;  %v1064_v46 = vrot.slane %v1063_v36, 2  ;;  %v1080_v39 = vrot.slane %v1057_v1, 4  ;;  %v1074_v28 = vrot.slane %v1056_v11, 4  ;;  %v2457_v15 = vpop.permute.xlu0 %1226 }
 0x14a   :  { %v1004_v14 = vadd.f32 %v1003_v58, %v1002_v52  ;;  %v998_v25 = vadd.f32 %v997_v6, %v996_v18  ;;  %v1051_v34 = vsub.f32 %v2401_v0, %v2419_v10  ;;  %v1050_v27 = vsub.f32 %v2403_v26, %v2419_v10 }
 0x14b   :  { %v1071_v31 = vadd.f32 %v1070_v60, %v1069_v33  ;;  %v1065_v29 = vadd.f32 %v1064_v46, %v1063_v36  ;;  %v1081_v30 = vadd.f32 %v1080_v39, %v1057_v1  ;;  %v1075_v40 = vadd.f32 %v1074_v28, %v1056_v11 }
 0x14c   :  { %v2464_v54 = vadd.f32 %v1004_v14, %v2406_v9  ;;  %v2467_v38 = vadd.f32 %v998_v25, %v2409_v47  ;;  %v1059_v2 = vand.u32 2147483647, %v1051_v34  ;;  %v1058_v24 = vand.u32 2147483647, %v1050_v27  ;;  %v2469_v44 = vpop.permute.xlu1 %1234 }
 0x14d   :  { %v1072_v42 = vrot.slane %v1071_v31, 1  ;;  %v1066_v48 = vrot.slane %v1065_v29, 1  ;;  %v1082_v0 = vrot.slane %v1081_v30, 2  ;;  %v1076_v12 = vrot.slane %v1075_v40, 2  ;;  %v2471_v41 = vpop.permute.xlu0 %1137 }
 0x14e   :  { %v1092_v26 = vrot.slane %v1059_v2, 4  ;;  %v1086_v17 = vrot.slane %v1058_v24, 4  ;;  %v1053_v13 = vsub.f32 %v2415_v21, %v2419_v10  ;;  %v1052_v9 = vsub.f32 %v2417_v35, %v2419_v10 }
 0x14f   :  { %v1073_v47 = vadd.f32 %v1072_v42, %v1071_v31  ;;  %v1067_v32 = vadd.f32 %v1066_v48, %v1065_v29  ;;  %v1083_v50 = vadd.f32 %v1082_v0, %v1081_v30  ;;  %v1077_v56 = vadd.f32 %v1076_v12, %v1075_v40 }
 0x150   :  { %v1093_v4 = vadd.f32 %v1092_v26, %v1059_v2  ;;  %v1087_v8 = vadd.f32 %v1086_v17, %v1058_v24  ;;  %v1061_v55 = vand.u32 2147483647, %v1053_v13  ;;  %v1060_v7 = vand.u32 2147483647, %v1052_v9  ;;  %v2479_v16 = vpop.permute.xlu1 %1238  ;;  %v2509_v26 = vld [vmem:[#allocation6 + $0x58] sm:$0xff] }
 0x151   :  { %v2482_v20 = vadd.f32 %v1073_v47, %v2422_v37  ;;  %v2485_v21 = vadd.f32 %v1067_v32, %v2425_v63  ;;  %v1084_v23 = vrot.slane %v1083_v50, 1  ;;  %v1078_v35 = vrot.slane %v1077_v56, 1  ;;  %v2487_v10 = vpop.permute.xlu0 %1141 }
 0x152   :  { %v1094_v59 = vrot.slane %v1093_v4, 2  ;;  %v1088_v43 = vrot.slane %v1087_v8, 2  ;;  %v1104_v19 = vrot.slane %v1061_v55, 4  ;;  %v1098_v52 = vrot.slane %v1060_v7, 4 }
 0x153   :  { %v1085_v18 = vadd.f32 %v1084_v23, %v1083_v50  ;;  %v1079_v33 = vadd.f32 %v1078_v35, %v1077_v56  ;;  %v1152_v36 = vsub.f32 %v2427_v51, %v2477_v3  ;;  %v1151_v37 = vsub.f32 %v2429_v22, %v2477_v3 }
 0x154   :  { %v1095_v1 = vadd.f32 %v1094_v59, %v1093_v4  ;;  %v1089_v11 = vadd.f32 %v1088_v43, %v1087_v8  ;;  %v1105_v63 = vadd.f32 %v1104_v19, %v1061_v55  ;;  %v1099_v58 = vadd.f32 %v1098_v52, %v1060_v7  ;;  %v2493_v6 = vpop.permute.xlu1 %1335 }
 0x155   :  { %v2496_v60 = vadd.f32 %v1085_v18, %v2436_v45  ;;  %v2499_v46 = vadd.f32 %v1079_v33, %v2439_v49  ;;  %v1160_v39 = vand.u32 2147483647, %v1152_v36  ;;  %v1159_v28 = vand.u32 2147483647, %v1151_v37  ;;  %v2501_v14 = vpop.permute.xlu0 %1331 }
 0x156   :  { %v1096_v51 = vrot.slane %v1095_v1, 1  ;;  %v1090_v25 = vrot.slane %v1089_v11, 1  ;;  %v1106_v34 = vrot.slane %v1105_v63, 2  ;;  %v1100_v22 = vrot.slane %v1099_v58, 2 }
 0x157   :  { %v1173_v27 = vrot.slane %v1160_v39, 4  ;;  %v1167_v31 = vrot.slane %v1159_v28, 4  ;;  %v1154_v29 = vsub.f32 %v2441_v5, %v2477_v3  ;;  %v1153_v45 = vsub.f32 %v2443_v62, %v2477_v3 }
 0x158   :  { %v1097_v30 = vadd.f32 %v1096_v51, %v1095_v1  ;;  %v1091_v40 = vadd.f32 %v1090_v25, %v1089_v11  ;;  %v1107_v49 = vadd.f32 %v1106_v34, %v1105_v63  ;;  %v1101_v2 = vadd.f32 %v1100_v22, %v1099_v58  ;;  %v2507_v24 = vpop.permute.xlu1 %1242 }
 0x159   :  { %v1174_v42 = vadd.f32 %v1173_v27, %v1160_v39  ;;  %v1168_v48 = vadd.f32 %v1167_v31, %v1159_v28  ;;  %v1162_v0 = vand.u32 2147483647, %v1154_v29  ;;  %v1161_v12 = vand.u32 2147483647, %v1153_v45  ;;  %v2511_v17 = vpop.permute.xlu0 %1145 }
 0x15a   :  { %v2514_v13 = vadd.f32 %v1097_v30, %v2450_v53  ;;  %v2517_v5 = vadd.f32 %v1091_v40, %v2453_v61  ;;  %v1108_v62 = vrot.slane %v1107_v49, 1  ;;  %v1102_v9 = vrot.slane %v1101_v2, 1 }
 0x15b   :  { %v1175_v47 = vrot.slane %v1174_v42, 2  ;;  %v1169_v32 = vrot.slane %v1168_v48, 2  ;;  %v1185_v50 = vrot.slane %v1162_v0, 4  ;;  %v1179_v56 = vrot.slane %v1161_v12, 4 }
 0x15c   :  { %v1109_v4 = vadd.f32 %v1108_v62, %v1107_v49  ;;  %v1103_v8 = vadd.f32 %v1102_v9, %v1101_v2  ;;  %v1257_v55 = vsub.f32 %v2455_v57, %v2509_v26  ;;  %v1256_v7 = vsub.f32 %v2457_v15, %v2509_v26  ;;  %v2523_v23 = vpop.permute.xlu1 %1149 }
 0x15d   :  { %v1176_v53 = vadd.f32 %v1175_v47, %v1174_v42  ;;  %v1170_v35 = vadd.f32 %v1169_v32, %v1168_v48  ;;  %v1186_v61 = vadd.f32 %v1185_v50, %v1162_v0  ;;  %v1180_v59 = vadd.f32 %v1179_v56, %v1161_v12  ;;  %v2525_v43 = vpop.permute.xlu0 %1339  ;;  %v2551_v50 = vld [vmem:[#allocation6 + $0x60] sm:$0xff] }
 0x15e   :  { %v2528_v19 = vadd.f32 %v1109_v4, %v2464_v54  ;;  %v2531_v52 = vadd.f32 %v1103_v8, %v2467_v38  ;;  %v1265_v18 = vand.u32 2147483647, %v1257_v55  ;;  %v1264_v33 = vand.u32 2147483647, %v1256_v7 }
 0x15f   :  { %v1177_v57 = vrot.slane %v1176_v53, 1  ;;  %v1171_v36 = vrot.slane %v1170_v35, 1  ;;  %v1187_v37 = vrot.slane %v1186_v61, 2  ;;  %v1181_v15 = vrot.slane %v1180_v59, 2 }
 0x160   :  { %v1278_v1 = vrot.slane %v1265_v18, 4  ;;  %v1272_v11 = vrot.slane %v1264_v33, 4  ;;  %v1258_v63 = vsub.f32 %v2469_v44, %v2509_v26  ;;  %v1155_v58 = vsub.f32 %v2471_v41, %v2477_v3  ;;  %v2537_v39 = vpop.permute.xlu1 %1343 }
 0x161   :  { %v1178_v54 = vadd.f32 %v1177_v57, %v1176_v53  ;;  %v1172_v28 = vadd.f32 %v1171_v36, %v1170_v35  ;;  %v1188_v38 = vadd.f32 %v1187_v37, %v1186_v61  ;;  %v1182_v51 = vadd.f32 %v1181_v15, %v1180_v59  ;;  %v2539_v25 = vpop.permute.xlu0 %1246 }
 0x162   :  { %v1279_v34 = vadd.f32 %v1278_v1, %v1265_v18  ;;  %v1273_v22 = vadd.f32 %v1272_v11, %v1264_v33  ;;  %v1266_v27 = vand.u32 2147483647, %v1258_v63  ;;  %v1163_v31 = vand.u32 2147483647, %v1155_v58 }
 0x163   :  { %v1216_v29 = vadd.f32 %v1178_v54, %v2482_v20  ;;  %v1215_v45 = vadd.f32 %v1172_v28, %v2485_v21  ;;  %v1189_v44 = vrot.slane %v1188_v38, 1  ;;  %v1183_v30 = vrot.slane %v1182_v51, 1 }
 0x164   :  { %v1280_v40 = vrot.slane %v1279_v34, 2  ;;  %v1274_v41 = vrot.slane %v1273_v22, 2  ;;  %v1284_v49 = vrot.slane %v1266_v27, 4  ;;  %v1191_v2 = vrot.slane %v1163_v31, 4  ;;  %v2543_v42 = vpop.permute.xlu1 %1440 }
 0x165   :  { %v1190_v48 = vadd.f32 %v1189_v44, %v1188_v38  ;;  %v1184_v0 = vadd.f32 %v1183_v30, %v1182_v51  ;;  %v1259_v12 = vsub.f32 %v2479_v16, %v2509_v26  ;;  %v1156_v62 = vsub.f32 %v2487_v10, %v2477_v3  ;;  %v2549_v9 = vpop.permute.xlu0 %1436 }
 0x166   :  { %v1281_v20 = vadd.f32 %v1280_v40, %v1279_v34  ;;  %v1275_v21 = vadd.f32 %v1274_v41, %v1273_v22  ;;  %v1285_v47 = vadd.f32 %v1284_v49, %v1266_v27  ;;  %v1192_v32 = vadd.f32 %v1191_v2, %v1163_v31 }
 0x167   :  { %v1218_v56 = vadd.f32 %v1190_v48, %v2496_v60  ;;  %v1217_v4 = vadd.f32 %v1184_v0, %v2499_v46  ;;  %v1267_v8 = vand.u32 2147483647, %v1259_v12  ;;  %v1164_v55 = vand.u32 2147483647, %v1156_v62 }
 0x168   :  { %v1282_v7 = vrot.slane %v1281_v20, 1  ;;  %v1276_v53 = vrot.slane %v1275_v21, 1  ;;  %v1286_v16 = vrot.slane %v1285_v47, 2  ;;  %v1193_v35 = vrot.slane %v1192_v32, 2  ;;  %v2559_v33 = vpop.permute.xlu1 %1347 }
 0x169   :  { %v1290_v61 = vrot.slane %v1267_v8, 4  ;;  %v1197_v10 = vrot.slane %v1164_v55, 4  ;;  %v1362_v59 = vsub.f32 %v2493_v6, %v2551_v50  ;;  %v1361_v18 = vsub.f32 %v2501_v14, %v2551_v50  ;;  %v2561_v63 = vpop.permute.xlu0 %1250 }
 0x16a   :  { %v1283_v57 = vadd.f32 %v1282_v7, %v1281_v20  ;;  %v1277_v60 = vadd.f32 %v1276_v53, %v1275_v21  ;;  %v1287_v36 = vadd.f32 %v1286_v16, %v1285_v47  ;;  %v1194_v46 = vadd.f32 %v1193_v35, %v1192_v32 }
 0x16b   :  { %v1291_v37 = vadd.f32 %v1290_v61, %v1267_v8  ;;  %v1198_v15 = vadd.f32 %v1197_v10, %v1164_v55  ;;  %v1370_v1 = vand.u32 2147483647, %v1362_v59  ;;  %v1369_v11 = vand.u32 2147483647, %v1361_v18 }
 0x16c   :  { %v2563_v58 = vadd.f32 %v1283_v57, %v1216_v29  ;;  %v2565_v54 = vadd.f32 %v1277_v60, %v1215_v45  ;;  %v1288_v6 = vrot.slane %v1287_v36, 1  ;;  %v1195_v28 = vrot.slane %v1194_v46, 1  ;;  %v2571_v41 = vpop.permute.xlu1 %1254 }
 0x16d   :  { %v1292_v38 = vrot.slane %v1291_v37, 2  ;;  %v1199_v14 = vrot.slane %v1198_v15, 2  ;;  %v1383_v51 = vrot.slane %v1370_v1, 4  ;;  %v1377_v34 = vrot.slane %v1369_v11, 4  ;;  %v2578_v20 = vpop.permute.xlu0 %1444 }
 0x16e   :  { %v1289_v22 = vadd.f32 %v1288_v6, %v1287_v36  ;;  %v1196_v27 = vadd.f32 %v1195_v28, %v1194_v46  ;;  %v1260_v31 = vsub.f32 %v2507_v24, %v2509_v26  ;;  %v1157_v44 = vsub.f32 %v2511_v17, %v2477_v3 }
 0x16f   :  { %v1293_v30 = vadd.f32 %v1292_v38, %v1291_v37  ;;  %v1200_v40 = vadd.f32 %v1199_v14, %v1198_v15  ;;  %v1384_v29 = vadd.f32 %v1383_v51, %v1370_v1  ;;  %v1378_v62 = vadd.f32 %v1377_v34, %v1369_v11 }
 0x170   :  { %v2573_v45 = vadd.f32 %v1289_v22, %v1217_v4  ;;  %v2576_v49 = vadd.f32 %v1196_v27, %v2517_v5  ;;  %v1268_v2 = vand.u32 2147483647, %v1260_v31  ;;  %v1165_v48 = vand.u32 2147483647, %v1157_v44  ;;  %v2589_v61 = vpop.permute.xlu1 %1448 }
 0x171   :  { %v1294_v0 = vrot.slane %v1293_v30, 1  ;;  %v1201_v12 = vrot.slane %v1200_v40, 1  ;;  %v1158_v17 = vsub.f32 %v2523_v23, %v2477_v3  ;;  %v1363_v47 = vsub.f32 %v2525_v43, %v2551_v50  ;;  %v2595_v57 = vpop.permute.xlu0 %1351 }
 0x172   :  { %v1296_v24 = vrot.slane %v1268_v2, 4  ;;  %v1203_v21 = vrot.slane %v1165_v48, 4  ;;  %v1385_v8 = vrot.slane %v1384_v29, 2  ;;  %v1379_v10 = vrot.slane %v1378_v62, 2 }
 0x173   :  { %v1295_v32 = vadd.f32 %v1294_v0, %v1293_v30  ;;  %v1202_v4 = vadd.f32 %v1201_v12, %v1200_v40  ;;  %v1166_v7 = vand.u32 2147483647, %v1158_v17  ;;  %v1371_v53 = vand.u32 2147483647, %v1363_v47 }
 0x174   :  { %v1297_v5 = vadd.f32 %v1296_v24, %v1268_v2  ;;  %v1204_v55 = vadd.f32 %v1203_v21, %v1165_v48  ;;  %v1386_v23 = vadd.f32 %v1385_v8, %v1384_v29  ;;  %v1364_v43 = vsub.f32 %v2537_v39, %v2551_v50  ;;  %v2603_v14 = vpop.permute.xlu1 %1545 }
 0x175   :  { %v2584_v16 = vadd.f32 %v1295_v32, %v1218_v56  ;;  %v2587_v35 = vadd.f32 %v1202_v4, %v2514_v13  ;;  %v1209_v59 = vrot.slane %v1166_v7, 4  ;;  %v1389_v3 = vrot.slane %v1371_v53, 4  ;;  %v2597_v13 = vld [vmem:[#allocation6 + $0x68] sm:$0xff]  ;;  %v2605_v40 = vpop.permute.xlu0 %1541 }
 0x176   :  { %v1261_v18 = vsub.f32 %v2539_v25, %v2509_v26  ;;  %v1298_v60 = vrot.slane %v1297_v5, 2  ;;  %v1205_v56 = vrot.slane %v1204_v55, 2  ;;  %v1372_v37 = vand.u32 2147483647, %v1364_v43 }
 0x177   :  { %v1210_v36 = vadd.f32 %v1209_v59, %v1166_v7  ;;  %v1390_v46 = vadd.f32 %v1389_v3, %v1371_v53  ;;  %v1380_v1 = vadd.f32 %v1379_v10, %v1378_v62  ;;  %v1467_v39 = vsub.f32 %v2543_v42, %v2597_v13 }
 0x178   :  { %v1269_v15 = vand.u32 2147483647, %v1261_v18  ;;  %v1395_v28 = vrot.slane %v1372_v37, 4  ;;  %v1466_v25 = vsub.f32 %v2549_v9, %v2597_v13  ;;  %v1387_v51 = vrot.slane %v1386_v23, 1  ;;  %v2611_v4 = vpop.permute.xlu1 %1452 }
 0x179   :  { %v1211_v11 = vrot.slane %v1210_v36, 2  ;;  %v1391_v6 = vrot.slane %v1390_v46, 2  ;;  %v1299_v34 = vadd.f32 %v1298_v60, %v1297_v5  ;;  %v1206_v22 = vadd.f32 %v1205_v56, %v1204_v55  ;;  %v2613_v43 = vpop.permute.xlu0 %1355 }
 0x17a   :  { %v1302_v38 = vrot.slane %v1269_v15, 4  ;;  %v1396_v27 = vadd.f32 %v1395_v28, %v1372_v37  ;;  %v1475_v44 = vand.u32 2147483647, %v1467_v39  ;;  %v1474_v30 = vand.u32 2147483647, %v1466_v25 }
 0x17b   :  { %v1381_v29 = vrot.slane %v1380_v1, 1  ;;  %v1212_v2 = vadd.f32 %v1211_v11, %v1210_v36  ;;  %v1392_v48 = vadd.f32 %v1391_v6, %v1390_v46  ;;  %v1365_v9 = vsub.f32 %v2559_v33, %v2551_v50 }
 0x17c   :  { %v1303_v31 = vadd.f32 %v1302_v38, %v1269_v15  ;;  %v1397_v0 = vrot.slane %v1396_v27, 2  ;;  %v1488_v42 = vrot.slane %v1475_v44, 4  ;;  %v1482_v62 = vrot.slane %v1474_v30, 4 }
 0x17d   :  { %v1262_v24 = vsub.f32 %v2561_v63, %v2509_v26  ;;  %v1388_v21 = vadd.f32 %v1387_v51, %v1386_v23  ;;  %v1300_v17 = vrot.slane %v1299_v34, 1  ;;  %v1207_v47 = vrot.slane %v1206_v22, 1 }
 0x17e   :  { %v1304_v12 = vrot.slane %v1303_v31, 2  ;;  %v1489_v32 = vadd.f32 %v1488_v42, %v1475_v44  ;;  %v1382_v8 = vadd.f32 %v1381_v29, %v1380_v1  ;;  %v1483_v5 = vadd.f32 %v1482_v62, %v1474_v30 }
 0x17f   :  { %v1373_v55 = vand.u32 2147483647, %v1365_v9  ;;  %v1270_v7 = vand.u32 2147483647, %v1262_v24  ;;  %v1213_v53 = vrot.slane %v1212_v2, 1  ;;  %v1393_v10 = vrot.slane %v1392_v48, 1 }
 0x180   :  { %v1398_v59 = vadd.f32 %v1397_v0, %v1396_v27  ;;  %v1305_v3 = vadd.f32 %v1304_v12, %v1303_v31  ;;  %v1263_v63 = vsub.f32 %v2571_v41, %v2509_v26  ;;  %v1468_v23 = vsub.f32 %v2578_v20, %v2597_v13  ;;  %v2625_v26 = vpop.permute.xlu1 %1359  ;;  %v2637_v27 = vpop.permute.xlu0 %1549 }
 0x181   :  { %v1401_v33 = vrot.slane %v1373_v55, 4  ;;  %v1308_v18 = vrot.slane %v1270_v7, 4  ;;  %v2620_v60 = vadd.f32 %v1388_v21, %v2563_v58  ;;  %v1301_v56 = vadd.f32 %v1300_v17, %v1299_v34 }
 0x182   :  { %v1208_v36 = vadd.f32 %v1207_v47, %v1206_v22  ;;  %v1490_v46 = vrot.slane %v1489_v32, 2  ;;  %v1484_v37 = vrot.slane %v1483_v5, 2  ;;  %v1271_v1 = vand.u32 2147483647, %v1263_v63 }
 0x183   :  { %v1402_v15 = vadd.f32 %v1401_v33, %v1373_v55  ;;  %v1476_v11 = vand.u32 2147483647, %v1468_v23  ;;  %v2623_v6 = vadd.f32 %v1382_v8, %v2565_v54  ;;  %v1214_v28 = vadd.f32 %v1213_v53, %v1212_v2  ;;  %v2639_v2 = vld [vmem:[#allocation6 + $0x70] sm:$0xff] }
 0x184   :  { %v1394_v38 = vadd.f32 %v1393_v10, %v1392_v48  ;;  %v1399_v39 = vrot.slane %v1398_v59, 1  ;;  %v1306_v41 = vrot.slane %v1305_v3, 1  ;;  %v1309_v20 = vadd.f32 %v1308_v18, %v1270_v7  ;;  %v2651_v17 = vpop.permute.xlu1 %1553  ;;  %v1457_v53 = vpop.permute.xlu0 %1456 }
 0x185   :  { %v1314_v25 = vrot.slane %v1271_v1, 4  ;;  %v1494_v58 = vrot.slane %v1476_v11, 4  ;;  %v2628_v51 = vadd.f32 %v1301_v56, %v2576_v49  ;;  %v2631_v34 = vadd.f32 %v1208_v36, %v2531_v52 }
 0x186   :  { %v1469_v22 = vsub.f32 %v2589_v61, %v2597_v13  ;;  %v1366_v54 = vsub.f32 %v2595_v57, %v2551_v50  ;;  %v1491_v31 = vadd.f32 %v1490_v46, %v1489_v32  ;;  %v1485_v44 = vadd.f32 %v1484_v37, %v1483_v5 }
 0x187   :  { %v1403_v30 = vrot.slane %v1402_v15, 2  ;;  %v1495_v29 = vadd.f32 %v1494_v58, %v1476_v11  ;;  %v2642_v49 = vadd.f32 %v1214_v28, %v2528_v19  ;;  %v2645_v52 = vadd.f32 %v1394_v38, %v2573_v45 }
 0x188   :  { %v1477_v48 = vand.u32 2147483647, %v1469_v22  ;;  %v1374_v0 = vand.u32 2147483647, %v1366_v54  ;;  %v1400_v61 = vadd.f32 %v1399_v39, %v1398_v59  ;;  %v1307_v12 = vadd.f32 %v1306_v41, %v1305_v3  ;;  %v1647_v22 = vpop.permute.xlu0 %1646 }
 0x189   :  { %v1310_v42 = vrot.slane %v1309_v20, 2  ;;  %v1315_v57 = vadd.f32 %v1314_v25, %v1271_v1  ;;  %v1572_v24 = vsub.f32 %v2603_v14, %v2639_v2  ;;  %v1571_v21 = vsub.f32 %v2605_v40, %v2639_v2 }
 0x18a   :  { %v1500_v62 = vrot.slane %v1477_v48, 4  ;;  %v1407_v9 = vrot.slane %v1374_v0, 4  ;;  %v1492_v19 = vrot.slane %v1491_v31, 1  ;;  %v1486_v47 = vrot.slane %v1485_v44, 1 }
 0x18b   :  { %v1404_v45 = vadd.f32 %v1403_v30, %v1402_v15  ;;  %v1496_v32 = vrot.slane %v1495_v29, 2  ;;  %v1580_v55 = vand.u32 2147483647, %v1572_v24  ;;  %v1579_v7 = vand.u32 2147483647, %v1571_v21 }
 0x18c   :  { %v1501_v8 = vadd.f32 %v1500_v62, %v1477_v48  ;;  %v1408_v5 = vadd.f32 %v1407_v9, %v1374_v0  ;;  %v2654_v10 = vadd.f32 %v1400_v61, %v2584_v16  ;;  %v2657_v59 = vadd.f32 %v1307_v12, %v2587_v35  ;;  %v1651_v35 = vpop.permute.xlu1 %1650 }
 0x18d   :  { %v1311_v14 = vadd.f32 %v1310_v42, %v1309_v20  ;;  %v1316_v3 = vrot.slane %v1315_v57, 2  ;;  %v1593_v18 = vrot.slane %v1580_v55, 4  ;;  %v1587_v63 = vrot.slane %v1579_v7, 4 }
 0x18e   :  { %v1502_v40 = vrot.slane %v1501_v8, 2  ;;  %v1409_v33 = vrot.slane %v1408_v5, 2  ;;  %v1493_v23 = vadd.f32 %v1492_v19, %v1491_v31  ;;  %v1487_v56 = vadd.f32 %v1486_v47, %v1485_v44 }
 0x18f   :  { %v1470_v36 = vsub.f32 %v2611_v4, %v2597_v13  ;;  %v1367_v46 = vsub.f32 %v2613_v43, %v2551_v50  ;;  %v1405_v37 = vrot.slane %v1404_v45, 1  ;;  %v1497_v16 = vadd.f32 %v1496_v32, %v1495_v29 }
 0x190   :  { %v1594_v15 = vadd.f32 %v1593_v18, %v1580_v55  ;;  %v1588_v1 = vadd.f32 %v1587_v63, %v1579_v7  ;;  %v1312_v11 = vrot.slane %v1311_v14, 1  ;;  %v1317_v28 = vadd.f32 %v1316_v3, %v1315_v57 }
 0x191   :  { %v1478_v38 = vand.u32 2147483647, %v1470_v36  ;;  %v1375_v39 = vand.u32 2147483647, %v1367_v46  ;;  %v1503_v41 = vadd.f32 %v1502_v40, %v1501_v8  ;;  %v1410_v20 = vadd.f32 %v1409_v33, %v1408_v5  ;;  %v1461_v8 = vpop.permute.xlu0 %1460 }
 0x192   :  { %v1595_v25 = vrot.slane %v1594_v15, 2  ;;  %v1589_v58 = vrot.slane %v1588_v1, 2  ;;  %v1368_v4 = vsub.f32 %v2625_v26, %v2551_v50  ;;  %v1573_v43 = vsub.f32 %v2637_v27, %v2639_v2  ;;  %v1558_v50 = vpop.permute.xlu1 %1557 }
 0x193   :  { %v1506_v54 = vrot.slane %v1478_v38, 4  ;;  %v1413_v31 = vrot.slane %v1375_v39, 4  ;;  %v1531_v44 = vadd.f32 %v1493_v23, %v2620_v60  ;;  %v2669_v30 = vadd.f32 %v1487_v56, %v2623_v6 }
 0x194   :  { %v1498_v29 = vrot.slane %v1497_v16, 1  ;;  %v1596_v48 = vadd.f32 %v1595_v25, %v1594_v15  ;;  %v1376_v12 = vand.u32 2147483647, %v1368_v4  ;;  %v1581_v42 = vand.u32 2147483647, %v1573_v43 }
 0x195   :  { %v1507_v0 = vadd.f32 %v1506_v54, %v1478_v38  ;;  %v1414_v61 = vadd.f32 %v1413_v31, %v1375_v39  ;;  %v1406_v57 = vadd.f32 %v1405_v37, %v1404_v45  ;;  %v2671_v62 = vadd.f32 %v1312_v11, %v1311_v14  ;;  %v2676_v14 = vld [vmem:[#allocation6 + $0x78] sm:$0xff] }
 0x196   :  { %v1318_v9 = vrot.slane %v1317_v28, 1  ;;  %v1504_v24 = vrot.slane %v1503_v41, 1  ;;  %v1411_v26 = vrot.slane %v1410_v20, 1  ;;  %v1590_v21 = vadd.f32 %v1589_v58, %v1588_v1 }
 0x197   :  { %v1508_v27 = vrot.slane %v1507_v0, 2  ;;  %v1599_v19 = vrot.slane %v1581_v42, 4  ;;  %v1499_v60 = vadd.f32 %v1498_v29, %v1497_v16  ;;  %v1419_v47 = vrot.slane %v1376_v12, 4  ;;  %v1465_v16 = vpop.permute.xlu1 %1464 }
 0x198   :  { %v1574_v6 = vsub.f32 %v2651_v17, %v2639_v2  ;;  %v1471_v32 = vsub.f32 %v1457_v53, %v2597_v13  ;;  %v1597_v5 = vrot.slane %v1596_v48, 1  ;;  %v1415_v45 = vrot.slane %v1414_v61, 2 }
 0x199   :  { %v1509_v55 = vadd.f32 %v1508_v27, %v1507_v0  ;;  %v1600_v7 = vadd.f32 %v1599_v19, %v1581_v42  ;;  %v1429_v3 = vadd.f32 %v1406_v57, %v2628_v51  ;;  %v2679_v40 = vadd.f32 %v1318_v9, %v1317_v28 }
 0x19a   :  { %v1582_v33 = vand.u32 2147483647, %v1574_v6  ;;  %v1479_v18 = vand.u32 2147483647, %v1471_v32  ;;  %v1505_v63 = vadd.f32 %v1504_v24, %v1503_v41  ;;  %v1412_v23 = vadd.f32 %v1411_v26, %v1410_v20  ;;  %v1655_v41 = vpop.permute.xlu0 %1654 }
 0x19b   :  { %v1591_v56 = vrot.slane %v1590_v21, 1  ;;  %v1601_v36 = vrot.slane %v1600_v7, 2  ;;  %v1420_v17 = vadd.f32 %v1419_v47, %v1376_v12  ;;  %v1677_v37 = vsub.f32 %v1651_v35, %v2676_v14  ;;  %v1659_v57 = vpop.permute.xlu1 %1658 }
 0x19c   :  { %v1605_v46 = vrot.slane %v1582_v33, 4  ;;  %v1512_v53 = vrot.slane %v1479_v18, 4  ;;  %v1532_v15 = vadd.f32 %v1499_v60, %v2645_v52  ;;  %v1598_v1 = vadd.f32 %v1597_v5, %v1596_v48 }
 0x19d   :  { %v1510_v11 = vrot.slane %v1509_v55, 1  ;;  %v1416_v38 = vadd.f32 %v1415_v45, %v1414_v61  ;;  %v1602_v51 = vadd.f32 %v1601_v36, %v1600_v7  ;;  %v1685_v39 = vand.u32 2147483647, %v1677_v37 }
 0x19e   :  { %v1606_v28 = vadd.f32 %v1605_v46, %v1582_v33  ;;  %v1676_v25 = vsub.f32 %v1647_v22, %v2676_v14  ;;  %v2685_v20 = vadd.f32 %v1505_v63, %v2654_v10  ;;  %v2688_v58 = vadd.f32 %v1412_v23, %v2657_v59  ;;  %v1562_v60 = vpop.permute.xlu0 %1561 }
 0x19f   :  { %v1592_v54 = vadd.f32 %v1591_v56, %v1590_v21  ;;  %v1513_v35 = vadd.f32 %v1512_v53, %v1479_v18  ;;  %v1421_v31 = vrot.slane %v1420_v17, 2  ;;  %v1698_v52 = vrot.slane %v1685_v39, 4 }
 0x1a0   :  { %v1607_v4 = vrot.slane %v1606_v28, 2  ;;  %v1684_v43 = vand.u32 2147483647, %v1676_v25  ;;  %v1636_v29 = vadd.f32 %v1598_v1, %v1531_v44  ;;  %v1417_v48 = vrot.slane %v1416_v38, 1 }
 0x1a1   :  { %v1575_v0 = vsub.f32 %v1558_v50, %v2639_v2  ;;  %v1472_v61 = vsub.f32 %v1461_v8, %v2597_v13  ;;  %v1511_v22 = vadd.f32 %v1510_v11, %v1509_v55  ;;  %v1603_v12 = vrot.slane %v1602_v51, 1 }
 0x1a2   :  { %v1699_v42 = vadd.f32 %v1698_v52, %v1685_v39  ;;  %v1692_v10 = vrot.slane %v1684_v43, 4  ;;  %v1635_v59 = vadd.f32 %v1592_v54, %v2669_v30  ;;  %v1514_v9 = vrot.slane %v1513_v35, 2 }
 0x1a3   :  { %v1583_v24 = vand.u32 2147483647, %v1575_v0  ;;  %v1480_v26 = vand.u32 2147483647, %v1472_v61  ;;  %v2693_v21 = vadd.f32 %v1421_v31, %v1420_v17  ;;  %v1608_v27 = vadd.f32 %v1607_v4, %v1606_v28  ;;  %v1663_v17 = vpop.permute.xlu1 %1662 }
 0x1a4   :  { %v1700_v19 = vrot.slane %v1699_v42, 2  ;;  %v1693_v44 = vadd.f32 %v1692_v10, %v1684_v43  ;;  %v2695_v47 = vadd.f32 %v1417_v48, %v1416_v38  ;;  %v1473_v32 = vsub.f32 %v1465_v16, %v2597_v13  ;;  %v1566_v38 = vpop.permute.xlu0 %1565 }
 0x1a5   :  { %v1611_v50 = vrot.slane %v1583_v24, 4  ;;  %v1518_v6 = vrot.slane %v1480_v26, 4  ;;  %v2698_v8 = vadd.f32 %v1511_v22, %v1429_v3  ;;  %v1604_v5 = vadd.f32 %v1603_v12, %v1602_v51 }
 0x1a6   :  { %v1701_v30 = vadd.f32 %v1700_v19, %v1699_v42  ;;  %v1694_v55 = vrot.slane %v1693_v44, 2  ;;  %v1515_v45 = vadd.f32 %v1514_v9, %v1513_v35  ;;  %v1481_v33 = vand.u32 2147483647, %v1473_v32 }
 0x1a7   :  { %v1612_v7 = vadd.f32 %v1611_v50, %v1583_v24  ;;  %v1678_v18 = vsub.f32 %v1655_v41, %v2676_v14  ;;  %v1423_v63 = vrot.slane %v2693_v21, 1  ;;  %v1609_v23 = vrot.slane %v1608_v27, 1  ;;  %v1667_v42 = vpop.permute.xlu1 %1666 }
 0x1a8   :  { %v1702_v56 = vrot.slane %v1701_v30, 1  ;;  %v1695_v36 = vadd.f32 %v1694_v55, %v1693_v44  ;;  %v1519_v53 = vadd.f32 %v1518_v6, %v1480_v26  ;;  %v1524_v37 = vrot.slane %v1481_v33, 4 }
 0x1a9   :  { %v1613_v46 = vrot.slane %v1612_v7, 2  ;;  %v1686_v13 = vand.u32 2147483647, %v1678_v18  ;;  %v1679_v1 = vsub.f32 %v1659_v57, %v2676_v14  ;;  %v1576_v11 = vsub.f32 %v1562_v60, %v2639_v2 }
 0x1aa   :  { %v1703_v3 = vadd.f32 %v1702_v56, %v1701_v30  ;;  %v1696_v16 = vrot.slane %v1695_v36, 1  ;;  %v1637_v51 = vadd.f32 %v1604_v5, %v1532_v15  ;;  %v1516_v28 = vrot.slane %v1515_v45, 1 }
 0x1ab   :  { %v1614_v39 = vadd.f32 %v1613_v46, %v1612_v7  ;;  %v1704_v25 = vrot.slane %v1686_v13, 4  ;;  %v1687_v35 = vand.u32 2147483647, %v1679_v1  ;;  %v1584_v31 = vand.u32 2147483647, %v1576_v11 }
 0x1ac   :  { %v1741_v41 = vadd.f32 %v1703_v3, %v1636_v29  ;;  %v1697_v54 = vadd.f32 %v1696_v16, %v1695_v36  ;;  %v1610_v4 = vadd.f32 %v1609_v23, %v1608_v27  ;;  %v1520_v52 = vrot.slane %v1519_v53, 2  ;;  %v1570_v27 = vpop.permute.xlu0 %1569 }
 0x1ad   :  { %v1525_v43 = vadd.f32 %v1524_v37, %v1481_v33  ;;  %v1705_v48 = vadd.f32 %v1704_v25, %v1686_v13  ;;  %v1710_v61 = vrot.slane %v1687_v35, 4  ;;  %v1617_v22 = vrot.slane %v1584_v31, 4 }
 0x1ae   :  { %v1740_v0 = vadd.f32 %v1697_v54, %v1635_v59  ;;  %v1680_v12 = vsub.f32 %v1663_v17, %v2676_v14  ;;  %v2705_v10 = vadd.f32 %v1516_v28, %v1515_v45  ;;  %v1615_v15 = vrot.slane %v1614_v39, 1 }
 0x1af   :  { %v1706_v57 = vrot.slane %v1705_v48, 2  ;;  %v1711_v9 = vadd.f32 %v1710_v61, %v1687_v35  ;;  %v1618_v24 = vadd.f32 %v1617_v22, %v1584_v31  ;;  %v1638_v19 = vadd.f32 %v1610_v4, %v2685_v20  ;;  %v1675_v20 = vpop.permute.xlu1 %1674 }
 0x1b0   :  { %v1758_v29 = vsel %vm1757_vm0, %v1741_v41, %v1740_v0  ;;  %v1688_v26 = vand.u32 2147483647, %v1680_v12  ;;  %v2709_v44 = vadd.f32 %v1520_v52, %v1519_v53  ;;  %v1526_v59 = vrot.slane %v1525_v43, 2  ;;  %v1671_v54 = vpop.permute.xlu0 %1670 }
 0x1b1   :  { %v1707_v60 = vadd.f32 %v1706_v57, %v1705_v48  ;;  %v1712_v50 = vrot.slane %v1711_v9, 2  ;;  %v1619_v6 = vrot.slane %v1618_v24, 2  ;;  %v1577_v5 = vsub.f32 %v1566_v38, %v2639_v2 }
 0x1b2   :  { %v1716_v32 = vrot.slane %v1688_v26, 4  ;;  %v1616_v30 = vadd.f32 %v1615_v15, %v1614_v39  ;;  %v1681_v45 = vsub.f32 %v1667_v42, %v2676_v14  ;;  %v1578_v7 = vsub.f32 %v1570_v27, %v2639_v2 }
 0x1b3   :  { %v1708_v55 = vrot.slane %v1707_v60, 1  ;;  %v1713_v33 = vadd.f32 %v1712_v50, %v1711_v9  ;;  %v1620_v18 = vadd.f32 %v1619_v6, %v1618_v24  ;;  %v1585_v56 = vand.u32 2147483647, %v1577_v5 }
 0x1b4   :  { %v1717_v23 = vadd.f32 %v1716_v32, %v1688_v26  ;;  %v1527_v36 = vadd.f32 %v1526_v59, %v1525_v43  ;;  %v1689_v46 = vand.u32 2147483647, %v1681_v45  ;;  %v1586_v53 = vand.u32 2147483647, %v1578_v7 }
 0x1b5   :  { %v1709_v17 = vadd.f32 %v1708_v55, %v1707_v60  ;;  %v1714_v37 = vrot.slane %v1713_v33, 1  ;;  %v1621_v13 = vrot.slane %v1620_v18, 1  ;;  %v1623_v16 = vrot.slane %v1585_v56, 4 }
 0x1b6   :  { %v1718_v3 = vrot.slane %v1717_v23, 2  ;;  %v1722_v11 = vrot.slane %v1689_v46, 4  ;;  %v1629_v38 = vrot.slane %v1586_v53, 4  ;;  %v1683_v28 = vsub.f32 %v1675_v20, %v2676_v14 }
 0x1b7   :  { %v1742_v1 = vadd.f32 %v1709_v17, %v1637_v51  ;;  %v1639_v2 = vadd.f32 %v1616_v30, %v2698_v8  ;;  %v1715_v39 = vadd.f32 %v1714_v37, %v1713_v33  ;;  %v1624_v41 = vadd.f32 %v1623_v16, %v1585_v56 }
 0x1b8   :  { %v1719_v25 = vadd.f32 %v1718_v3, %v1717_v23  ;;  %v1723_v31 = vadd.f32 %v1722_v11, %v1689_v46  ;;  %v1630_v4 = vadd.f32 %v1629_v38, %v1586_v53  ;;  %v1691_v52 = vand.u32 2147483647, %v1683_v28 }
 0x1b9   :  { %v1760_v35 = vsel %vm1759_vm1, %v1742_v1, %v1758_v29  ;;  %v1743_v43 = vadd.f32 %v1715_v39, %v1638_v19  ;;  %v1622_v48 = vadd.f32 %v1621_v13, %v1620_v18  ;;  %v1625_v61 = vrot.slane %v1624_v41, 2 }
 0x1ba   :  { %v1720_v0 = vrot.slane %v1719_v25, 1  ;;  %v1724_v51 = vrot.slane %v1723_v31, 2  ;;  %v1631_v22 = vrot.slane %v1630_v4, 2  ;;  %v1734_v12 = vrot.slane %v1691_v52, 4 }
 0x1bb   :  { %v1682_v42 = vsub.f32 %v1671_v54, %v2676_v14  ;;  %v1626_v8 = vadd.f32 %v1625_v61, %v1624_v41  ;;  %v1535_v26 = vadd.f32 %v2705_v10, %v2688_v58  ;;  %v1528_v27 = vrot.slane %v1527_v36, 1 }
 0x1bc   :  { %v1721_v15 = vadd.f32 %v1720_v0, %v1719_v25  ;;  %v1725_v57 = vadd.f32 %v1724_v51, %v1723_v31  ;;  %v1632_v9 = vadd.f32 %v1631_v22, %v1630_v4  ;;  %v1735_v24 = vadd.f32 %v1734_v12, %v1691_v52 }
 0x1bd   :  { %v1690_v29 = vand.u32 2147483647, %v1682_v42  ;;  %v1762_v59 = vsel %vm1761_vm2, %v1743_v43, %v1760_v35  ;;  %v1522_v60 = vrot.slane %v2709_v44, 1  ;;  %v1424_v14 = vadd.f32 %v1423_v63, %v2693_v21 }
 0x1be   :  { %v1744_v19 = vadd.f32 %v1721_v15, %v1639_v2  ;;  %v1726_v50 = vrot.slane %v1725_v57, 1  ;;  %v1736_v6 = vrot.slane %v1735_v24, 2  ;;  %v1640_v5 = vadd.f32 %v1622_v48, %v1535_v26 }
 0x1bf   :  { %v1728_v32 = vrot.slane %v1690_v29, 4  ;;  %v1633_v30 = vrot.slane %v1632_v9, 1  ;;  %v1627_v45 = vrot.slane %v1626_v8, 1  ;;  %v1326_v10 = vadd.f32 %v2671_v62, %v2631_v34 }
 0x1c0   :  { %v1764_v55 = vsel %vm1763_vm3, %v1744_v19, %v1762_v59  ;;  %v1727_v7 = vadd.f32 %v1726_v50, %v1725_v57  ;;  %v1737_v33 = vadd.f32 %v1736_v6, %v1735_v24  ;;  %v1327_v18 = vadd.f32 %v2679_v40, %v2642_v49 }
 0x1c1   :  { %v1729_v58 = vadd.f32 %v1728_v32, %v1690_v29  ;;  %v1529_v23 = vadd.f32 %v1528_v27, %v1527_v36  ;;  %v1523_v56 = vadd.f32 %v1522_v60, %v2709_v44  ;;  %v1634_v46 = vadd.f32 %v1633_v30, %v1632_v9 }
 0x1c2   :  { %v1745_v20 = vadd.f32 %v1727_v7, %v1640_v5  ;;  %v1738_v21 = vrot.slane %v1737_v33, 1  ;;  %v1432_v17 = vadd.f32 %v1424_v14, %v1327_v18  ;;  %v1431_v53 = vadd.f32 %v2695_v47, %v1326_v10 }
 0x1c3   :  { %v1730_v63 = vrot.slane %v1729_v58, 2  ;;  %v1628_v37 = vadd.f32 %v1627_v45, %v1626_v8 }
 0x1c4   :  { %v1766_v3 = vsel %vm1765_vm4, %v1745_v20, %v1764_v55  ;;  %v1537_v16 = vadd.f32 %v1529_v23, %v1432_v17  ;;  %v1739_v1 = vadd.f32 %v1738_v21, %v1737_v33  ;;  %v1536_v34 = vadd.f32 %v1523_v56, %v1431_v53 }
 0x1c5   :  { %v1731_v13 = vadd.f32 %v1730_v63, %v1729_v58 }
 0x1c6   :  { %v1642_v11 = vadd.f32 %v1634_v46, %v1537_v16  ;;  %v1641_v49 = vadd.f32 %v1628_v37, %v1536_v34 }
 0x1c7   :  { %v1732_v62 = vrot.slane %v1731_v13, 1 }
 0x1c8   :  { %v1747_v36 = vadd.f32 %v1739_v1, %v1642_v11 }
 0x1c9   :  { %v1733_v40 = vadd.f32 %v1732_v62, %v1731_v13 }
 0x1cb   :  { %v1746_v44 = vadd.f32 %v1733_v40, %v1641_v49 }
 0x1cd   :  { %v1768_v38 = vsel %vm1767_vm5, %v1746_v44, %v1766_v3 }
 0x1ce   :  { %v1770_v28 = vsel %vm1769_vm6, %v1747_v36, %v1768_v38 }
 0x1cf   :  { %1778 = vst [vmem:[#allocation8] sm:$0xff] %v1770_v28 }
 0x1d0   :  { %1855 = shalt.err (!%p1852_p6)
}
 0x1d1   :  { %s1856_s10 = scalar_lea.hbm %s2745_s2, 128 }
 0x1d2   :  { %p1857_p7 = scmp.ne.s32.totalorder %s2745_s2, %s1856_s10  ;;  %p1860_p8 = scmp.lt.u32.totalorder %s1856_s10, %s2745_s2 }
 0x1d4   :  { %p1862_p9 = pnand %p1860_p8, %p1857_p7 }
 0x1d6   :  { %1865 = shalt.err (!%p1862_p9)
}
 0x1d7   :  { %1788 = dma.vmem_to_hbm [thread:$0]  %s1786_s6, 128, %s2745_s2, [#allocation5]  }
 0x1d8   :  { %1870 = dma.done.wait [#allocation5], 128  }
 0x1d9   :  { %1871 = vsyncadd [#allocation5], 4294967168 }
 0x1da   :  { %1792 = vsyncpa [#allocation4], 1 }
 0x1db   :  { %1793 = vsyncpa [#allocation7], 1 }
 0x1dc   :  { %1794 = vsyncpa [#allocation5], 1 }

</bundles_post_ra>
